<compile_context>
chip_gen: v7x
topology: tpu7x:2x2x1
jax: 0.10.0
libtpu: 0.0.40
codegen_flags: <defaults>
</compile_context>

<pallas_src>
import functools

import jax
import jax.numpy as jnp
from jax.experimental import pallas as pl
from jax.experimental.pallas import tpu as pltpu


# --------------------------------------------------------------------------
# Shared per-sample attention body (operands already resident in VMEM).
# qp already carries the 1/sqrt(head_dim) scale; vo already carries the
# out-projection (both folded into the weights in the wrapper).
# --------------------------------------------------------------------------
def _attend_one(qp, kp, vo, head_mask, bo, num_heads, cdt):
    f32 = jnp.float32
    Lq, E = qp.shape
    Lk = kp.shape[0]

    # All heads' Q K^T in ONE MXU push: block-diagonal K operand built from a
    # cheap tile + precomputed 0/1 lane mask.
    kbd = (jnp.tile(kp.T, (1, num_heads)) * head_mask).astype(cdt)      # (E, H*Lk)
    s_all = jnp.dot(qp.astype(cdt), kbd, preferred_element_type=f32)    # (Lq, H*Lk)

    vo_c = vo.astype(cdt)                                               # (Lk, H*E)
    out = jnp.zeros((Lq, E), f32) + bo            # out-proj (+ folded V) bias
    w_acc = jnp.zeros((Lq, Lk), f32)
    for h in range(num_heads):                    # static unroll; H is small
        s = s_all[:, h * Lk:(h + 1) * Lk]
        s = s - jnp.max(s, axis=-1, keepdims=True)
        p = jnp.exp(s)
        # Exact normalization (approx EUP reciprocal caused the old mismatch).
        p = p / jnp.sum(p, axis=-1, keepdims=True)
        w_acc = w_acc + p
        # out-projection already folded into vo -> single dot per head.
        out = out + jnp.dot(p.astype(cdt), vo_c[:, h * E:(h + 1) * E],
                            preferred_element_type=f32)
    return out, w_acc * (1.0 / num_heads)


# --------------------------------------------------------------------------
# Kernel A: one grid step per batch element (parallel across TCs on v7x).
# --------------------------------------------------------------------------
def _cross_attn_kernel_batched(obj_ref, glb_ref, wq_ref, wk_ref, wvo_ref,
                               b_ref, mask_ref, *out_refs,
                               num_heads, with_attn, cdt):
    f32 = jnp.float32
    bias = b_ref[...]                                   # (3, E) f32
    bq, bk, bo = bias[0:1], bias[1:2], bias[2:3]

    obj = obj_ref[...]                                  # (Lq, Cobj) compute dtype
    glb = glb_ref[...]                                  # (Lk, Cglb)

    qp = jnp.dot(obj, wq_ref[...], preferred_element_type=f32) + bq   # (Lq, E)
    kp = jnp.dot(glb, wk_ref[...], preferred_element_type=f32) + bk   # (Lk, E)
    vo = jnp.dot(glb, wvo_ref[...], preferred_element_type=f32)       # (Lk, H*E)

    o, w = _attend_one(qp, kp, vo, mask_ref[...], bo, num_heads, cdt)
    out_refs[0][...] = o.astype(out_refs[0].dtype)
    if with_attn:
        out_refs[1][...] = w.astype(out_refs[1].dtype)


# --------------------------------------------------------------------------
# Kernel B: single grid step, batch flattened into the projection matmul rows
# (best on single-TensorCore chips: v5e / v6e, or when B == 1).
# --------------------------------------------------------------------------
def _cross_attn_kernel_flat(obj_ref, glb_ref, wq_ref, wk_ref, wvo_ref,
                            b_ref, mask_ref, *out_refs,
                            num_heads, with_attn, cdt, batch, lq, lk):
    f32 = jnp.float32
    bias = b_ref[...]                                   # (3, E) f32
    bq, bk, bo = bias[0:1], bias[1:2], bias[2:3]

    qp = jnp.dot(obj_ref[...], wq_ref[...], preferred_element_type=f32) + bq   # (B*Lq, E)
    kp = jnp.dot(glb_ref[...], wk_ref[...], preferred_element_type=f32) + bk   # (B*Lk, E)
    vo = jnp.dot(glb_ref[...], wvo_ref[...], preferred_element_type=f32)       # (B*Lk, H*E)
    mask = mask_ref[...]

    out_ref = out_refs[0]
    attn_ref = out_refs[1] if with_attn else None
    # TODO(synk): replace this static unroll with a grid axis once B grows
    # past ~4-8 (code bloat / vreg live-range pressure); fine at B=2.
    for b in range(batch):
        o, w = _attend_one(qp[b * lq:(b + 1) * lq],
                           kp[b * lk:(b + 1) * lk],
                           vo[b * lk:(b + 1) * lk],
                           mask, bo, num_heads, cdt)
        out_ref[b * lq:(b + 1) * lq, :] = o.astype(out_ref.dtype)
        if with_attn:
            attn_ref[b * lq:(b + 1) * lq, :] = w.astype(attn_ref.dtype)


# --------------------------------------------------------------------------
# Wrapper-side algebra: fold everything foldable into three weight slabs.
# --------------------------------------------------------------------------
def _fuse_params(params, num_heads, compute_dtype):
    f32 = jnp.float32
    E = params["wiq"].shape[0]
    d = E // num_heads
    scale = jnp.float32(1.0 / (d ** 0.5))

    wq_eff = (params["wq"].astype(f32) @ params["wiq"].astype(f32)) * scale       # (Cobj, E)
    bq_eff = (params["bq"].astype(f32) @ params["wiq"].astype(f32)
              + params["biq"].astype(f32)) * scale                                # (1, E)
    wk_eff = params["wk"].astype(f32) @ params["wik"].astype(f32)                 # (Cglb, E)
    bk_eff = params["bk"].astype(f32) @ params["wik"].astype(f32) + params["bik"].astype(f32)
    wv_eff = params["wv"].astype(f32) @ params["wiv"].astype(f32)                 # (Cglb, E)
    bv_eff = params["bv"].astype(f32) @ params["wiv"].astype(f32) + params["biv"].astype(f32)
    wo = params["wo"].astype(f32)                                                 # (E, E)

    # Fold the out-projection into the value projection per head, and the
    # value-bias contribution into the output bias (softmax rows sum to 1):
    #   out = sum_h P_h @ (glb @ wvo_h) + (bo + bv_eff @ wo)
    wvo = jnp.concatenate(
        [wv_eff[:, h * d:(h + 1) * d] @ wo[h * d:(h + 1) * d, :]
         for h in range(num_heads)], axis=1)                                      # (Cglb, H*E)
    bo_eff = params["bo"].astype(f32) + bv_eff @ wo                               # (1, E)

    biases = jnp.concatenate([bq_eff, bk_eff, bo_eff], axis=0)                    # (3, E)
    return (wq_eff.astype(compute_dtype), wk_eff.astype(compute_dtype),
            wvo.astype(compute_dtype), biases.astype(f32))


def _make_head_mask(E, num_heads, Lk):
    """0/1 mask turning tile(kp.T, (1, H)) into a block-diagonal (E, H*Lk)."""
    d = E // num_heads
    row_head = jnp.arange(E, dtype=jnp.int32)[:, None] // d
    col_head = jnp.arange(num_heads * Lk, dtype=jnp.int32)[None, :] // Lk
    return (row_head == col_head).astype(jnp.float32)


def _single_tensorcore():
    """Best-effort: v7x has 2 TensorCores/chip, older generations have 1."""
    try:
        kind = jax.devices()[0].device_kind.lower()
    except Exception:
        return True
    return not ("v7" in kind or "7x" in kind)


def cross_attention_pallas(object_features, global_features, params, num_heads,
                           *, return_attn_weights=False, collapse_batch=None,
                           compute_dtype=jnp.bfloat16):
    """object_features: (B, Lq, Cobj); global_features: (B, Lk, Cglb).
    Returns `out` (and head-averaged attn weights if return_attn_weights)."""
    B, Lq, Cobj = object_features.shape
    _, Lk, Cglb = global_features.shape
    wq_eff, wk_eff, wvo, biases = _fuse_params(params, num_heads, compute_dtype)
    E = wq_eff.shape[1]
    assert E % num_heads == 0
    head_mask = _make_head_mask(E, num_heads, Lk)                  # (E, H*Lk) f32

    # bf16 activations in the wrapper halve HBM->VMEM DMA bytes (f32 = no-op).
    obj_in = object_features.astype(compute_dtype)
    glb_in = global_features.astype(compute_dtype)

    if collapse_batch is None:
        collapse_batch = _single_tensorcore() or B == 1

    cparams = pltpu.CompilerParams(
        dimension_semantics=("arbitrary",) if collapse_batch else ("parallel",),
        vmem_limit_bytes=32 * 1024 * 1024)

    if collapse_batch:
        # Single grid step; batch flattened into the projection-matmul rows.
        # TODO(synk): tile B*Lq over a grid axis once B*Lk*Cglb approaches VMEM.
        obj2 = obj_in.reshape(B * Lq, Cobj)
        glb2 = glb_in.reshape(B * Lk, Cglb)
        kernel = functools.partial(
            _cross_attn_kernel_flat, num_heads=num_heads,
            with_attn=return_attn_weights, cdt=compute_dtype,
            batch=B, lq=Lq, lk=Lk)
        in_specs = [
            pl.BlockSpec((B * Lq, Cobj), lambda i: (0, 0)),
            pl.BlockSpec((B * Lk, Cglb), lambda i: (0, 0)),
            pl.BlockSpec((Cobj, E), lambda i: (0, 0)),
            pl.BlockSpec((Cglb, E), lambda i: (0, 0)),
            pl.BlockSpec((Cglb, num_heads * E), lambda i: (0, 0)),
            pl.BlockSpec((3, E), lambda i: (0, 0)),
            pl.BlockSpec((E, num_heads * Lk), lambda i: (0, 0)),
        ]
        out_specs = [pl.BlockSpec((B * Lq, E), lambda i: (0, 0))]
        out_shape = [jax.ShapeDtypeStruct((B * Lq, E), jnp.float32)]
        if return_attn_weights:
            out_specs.append(pl.BlockSpec((B * Lq, Lk), lambda i: (0, 0)))
            out_shape.append(jax.ShapeDtypeStruct((B * Lq, Lk), jnp.float32))
        results = pl.pallas_call(
            kernel, out_shape=out_shape, grid=(1,),
            in_specs=in_specs, out_specs=out_specs,
            compiler_params=cparams,
        )(obj2, glb2, wq_eff, wk_eff, wvo, biases, head_mask)
        out = results[0].reshape(B, Lq, E)
        if return_attn_weights:
            return out, results[1].reshape(B, Lq, Lk)
        return out

    # Per-batch grid (parallel across TensorCores on v7x), batch dim squeezed.
    kernel = functools.partial(
        _cross_attn_kernel_batched, num_heads=num_heads,
        with_attn=return_attn_weights, cdt=compute_dtype)
    in_specs = [
        pl.BlockSpec((None, Lq, Cobj), lambda b: (b, 0, 0)),
        pl.BlockSpec((None, Lk, Cglb), lambda b: (b, 0, 0)),
        pl.BlockSpec((Cobj, E), lambda b: (0, 0)),
        pl.BlockSpec((Cglb, E), lambda b: (0, 0)),
        pl.BlockSpec((Cglb, num_heads * E), lambda b: (0, 0)),
        pl.BlockSpec((3, E), lambda b: (0, 0)),
        pl.BlockSpec((E, num_heads * Lk), lambda b: (0, 0)),
    ]
    out_specs = [pl.BlockSpec((None, Lq, E), lambda b: (b, 0, 0))]
    out_shape = [jax.ShapeDtypeStruct((B, Lq, E), jnp.float32)]
    if return_attn_weights:
        out_specs.append(pl.BlockSpec((None, Lq, Lk), lambda b: (b, 0, 0)))
        out_shape.append(jax.ShapeDtypeStruct((B, Lq, Lk), jnp.float32))
    results = pl.pallas_call(
        kernel, out_shape=out_shape, grid=(B,),
        in_specs=in_specs, out_specs=out_specs,
        compiler_params=cparams,
    )(obj_in, glb_in, wq_eff, wk_eff, wvo, biases, head_mask)
    if return_attn_weights:
        return results[0], results[1]
    return results[0]


# --------------------------------------------------------------------------
# Pure-JAX reference (unfused, mirrors PyTorch eval-mode semantics exactly).
# --------------------------------------------------------------------------
def _reference(object_features, global_features, params, num_heads):
    q = object_features @ params["wq"] + params["bq"]
    k = global_features @ params["wk"] + params["bk"]
    v = global_features @ params["wv"] + params["bv"]
    qp = q @ params["wiq"] + params["biq"]
    kp = k @ params["wik"] + params["bik"]
    vp = v @ params["wiv"] + params["biv"]
    B, Lq, E = qp.shape
    Lk = kp.shape[1]
    d = E // num_heads
    qh = qp.reshape(B, Lq, num_heads, d).transpose(0, 2, 1, 3)
    kh = kp.reshape(B, Lk, num_heads, d).transpose(0, 2, 1, 3)
    vh = vp.reshape(B, Lk, num_heads, d).transpose(0, 2, 1, 3)
    s = jnp.einsum("bhqd,bhkd->bhqk", qh, kh) / (d ** 0.5)
    p = jax.nn.softmax(s, axis=-1)
    ctx = jnp.einsum("bhqk,bhkd->bhqd", p, vh)
    ctx = ctx.transpose(0, 2, 1, 3).reshape(B, Lq, E)
    out = ctx @ params["wo"] + params["bo"]
    return out, p.mean(axis=1)


def _make_params(key, obj_in, glb_in, embed_dim):
    """Deterministic synthetic parameters (torch Linear weight already
    transposed to (in, out); biases as (1, out))."""
    keys = jax.random.split(key, 16)

    def w(k, i, o):
        return jax.random.normal(k, (i, o), jnp.float32) * (1.0 / (i ** 0.5))

    def b(k, o):
        return jax.random.normal(k, (1, o), jnp.float32) * 0.01

    E = embed_dim
    return dict(
        wq=w(keys[0], obj_in, E), bq=b(keys[1], E),
        wk=w(keys[2], glb_in, E), bk=b(keys[3], E),
        wv=w(keys[4], glb_in, E), bv=b(keys[5], E),
        wiq=w(keys[6], E, E), biq=b(keys[7], E),
        wik=w(keys[8], E, E), bik=b(keys[9], E),
        wiv=w(keys[10], E, E), biv=b(keys[11], E),
        wo=w(keys[12], E, E), bo=b(keys[13], E),
    )


if __name__ == "__main__":
    # Full-precision f32 matmuls for the XLA-side reference (and any interpret
    # fallback), so the tight comparison is not polluted by XLA's default
    # bf16 matmul precision on TPU.  Does not change the Pallas/Mosaic kernel.
    jax.config.update("jax_default_matmul_precision", "highest")

    B, Lq, Lk = 2, 8, 16
    obj_in_c, glb_in_c = 32, 48
    embed_dim, num_heads = 32, 4

    key = jax.random.PRNGKey(0)
    k_obj, k_glb, k_par = jax.random.split(key, 3)
    object_features = jax.random.normal(k_obj, (B, Lq, obj_in_c), jnp.float32)
    global_features = jax.random.normal(k_glb, (B, Lk, glb_in_c), jnp.float32)
    params = _make_params(k_par, obj_in_c, glb_in_c, embed_dim)

    ref_out, ref_w = _reference(object_features, global_features, params, num_heads)

    # 1) Near-exact f32 compute path, both grid strategies (tight tolerance;
    #    only weight-fusion reassociation differs from the reference).
    tight = dict(atol=5e-3, rtol=5e-3)
    out_b, w_b = cross_attention_pallas(
        object_features, global_features, params, num_heads,
        return_attn_weights=True, collapse_batch=False,
        compute_dtype=jnp.float32)
    jax.block_until_ready(out_b)
    assert jnp.allclose(out_b, ref_out, **tight)
    assert jnp.allclose(w_b, ref_w, **tight)

    out_c, w_c = cross_attention_pallas(
        object_features, global_features, params, num_heads,
        return_attn_weights=True, collapse_batch=True,
        compute_dtype=jnp.float32)
    jax.block_until_ready(out_c)
    assert jnp.allclose(out_c, ref_out, **tight)
    assert jnp.allclose(w_c, ref_w, **tight)

    # 2) Default perf path: bf16 matmul operands, f32 accumulation/softmax.
    #    bf16 operand rounding (~2^-9 relative) at these magnitudes -> loose tol.
    loose = dict(atol=1e-1, rtol=1e-1)
    out_bf, w_bf = cross_attention_pallas(
        object_features, global_features, params, num_heads,
        return_attn_weights=True)
    jax.block_until_ready(out_bf)
    assert jnp.allclose(out_bf, ref_out, **loose)
    assert jnp.allclose(w_bf, ref_w, **loose)

    # 3) Default entry point: no attention weights (drops 2nd output pipeline).
    out_only = cross_attention_pallas(
        object_features, global_features, params, num_heads)
    jax.block_until_ready(out_only)
    assert jnp.allclose(out_only, ref_out, **loose)

    print("KERNEL_OK")
</pallas_src>

<mosaic_0001>
module attributes {stable_mosaic.version = 11 : i64} {
  func.func @_cross_attn_kernel_batched(%arg0: i32, %arg1: memref<1x8x32xf32, #tpu.memory_space<vmem>>, %arg2: memref<1x16x48xf32, #tpu.memory_space<vmem>>, %arg3: memref<32x32xf32, #tpu.memory_space<vmem>>, %arg4: memref<48x32xf32, #tpu.memory_space<vmem>>, %arg5: memref<48x128xf32, #tpu.memory_space<vmem>>, %arg6: memref<3x32xf32, #tpu.memory_space<vmem>>, %arg7: memref<32x64xf32, #tpu.memory_space<vmem>>, %arg8: memref<1x8x32xf32, #tpu.memory_space<vmem>>, %arg9: memref<1x8x16xf32, #tpu.memory_space<vmem>>) attributes {dimension_semantics = [#tpu.dimension_semantics<parallel>], iteration_bounds = array<i64: 2>, scalar_prefetch = 0 : i64, scratch_operands = 0 : i64, tpu.core_type = #tpu.core_type<tc>, window_params = [{transform_indices = @transform_0, window_bounds = array<i64: 1, 8, 32>}, {transform_indices = @transform_1, window_bounds = array<i64: 1, 16, 48>}, {pipeline_mode = #tpu.pipeline_mode<synchronous>, transform_indices = @transform_2, window_bounds = array<i64: 32, 32>}, {pipeline_mode = #tpu.pipeline_mode<synchronous>, transform_indices = @transform_3, window_bounds = array<i64: 48, 32>}, {pipeline_mode = #tpu.pipeline_mode<synchronous>, transform_indices = @transform_4, window_bounds = array<i64: 48, 128>}, {pipeline_mode = #tpu.pipeline_mode<synchronous>, transform_indices = @transform_5, window_bounds = array<i64: 3, 32>}, {pipeline_mode = #tpu.pipeline_mode<synchronous>, transform_indices = @transform_6, window_bounds = array<i64: 32, 64>}, {transform_indices = @transform_7, window_bounds = array<i64: 1, 8, 32>}, {transform_indices = @transform_8, window_bounds = array<i64: 1, 8, 16>}]} {
    %c0 = arith.constant 0 : index
    %c0_0 = arith.constant 0 : index
    %0 = vector.load %arg6[%c0, %c0_0] : memref<3x32xf32, #tpu.memory_space<vmem>>, vector<3x32xf32>
    %1 = vector.extract_strided_slice %0 {offsets = [0, 0], sizes = [1, 32], strides = [1, 1]} : vector<3x32xf32> to vector<1x32xf32>
    %2 = vector.extract_strided_slice %0 {offsets = [1, 0], sizes = [1, 32], strides = [1, 1]} : vector<3x32xf32> to vector<1x32xf32>
    %3 = vector.extract_strided_slice %0 {offsets = [2, 0], sizes = [1, 32], strides = [1, 1]} : vector<3x32xf32> to vector<1x32xf32>
    %c0_1 = arith.constant 0 : index
    %c0_2 = arith.constant 0 : index
    %c0_3 = arith.constant 0 : index
    %4 = vector.load %arg1[%c0_1, %c0_2, %c0_3] : memref<1x8x32xf32, #tpu.memory_space<vmem>>, vector<1x8x32xf32>
    %5 = vector.shape_cast %4 : vector<1x8x32xf32> to vector<8x32xf32>
    %c0_4 = arith.constant 0 : index
    %c0_5 = arith.constant 0 : index
    %c0_6 = arith.constant 0 : index
    %6 = vector.load %arg2[%c0_4, %c0_5, %c0_6] : memref<1x16x48xf32, #tpu.memory_space<vmem>>, vector<1x16x48xf32>
    %7 = vector.shape_cast %6 : vector<1x16x48xf32> to vector<16x48xf32>
    %c0_7 = arith.constant 0 : index
    %c0_8 = arith.constant 0 : index
    %8 = vector.load %arg3[%c0_7, %c0_8] : memref<32x32xf32, #tpu.memory_space<vmem>>, vector<32x32xf32>
    %cst = arith.constant dense<0.000000e+00> : vector<8x32xf32>
    %9 = tpu.matmul %5, %8, %cst {dimension_numbers = #tpu.dot_dimension_numbers<[1], [0], [0], [1], [0, 0, 1, 1], [], []>, precision = #tpu.contract_precision<fp32>} : vector<8x32xf32>, vector<32x32xf32>, vector<8x32xf32> -> vector<8x32xf32>
    %10 = vector.broadcast %1 : vector<1x32xf32> to vector<8x32xf32>
    %11 = arith.addf %9, %10 : vector<8x32xf32>
    %c0_9 = arith.constant 0 : index
    %c0_10 = arith.constant 0 : index
    %12 = vector.load %arg4[%c0_9, %c0_10] : memref<48x32xf32, #tpu.memory_space<vmem>>, vector<48x32xf32>
    %cst_11 = arith.constant dense<0.000000e+00> : vector<16x32xf32>
    %13 = tpu.matmul %7, %12, %cst_11 {dimension_numbers = #tpu.dot_dimension_numbers<[1], [0], [0], [1], [0, 0, 1, 1], [], []>, precision = #tpu.contract_precision<fp32>} : vector<16x48xf32>, vector<48x32xf32>, vector<16x32xf32> -> vector<16x32xf32>
    %14 = vector.broadcast %2 : vector<1x32xf32> to vector<16x32xf32>
    %15 = arith.addf %13, %14 : vector<16x32xf32>
    %c0_12 = arith.constant 0 : index
    %c0_13 = arith.constant 0 : index
    %16 = vector.load %arg5[%c0_12, %c0_13] : memref<48x128xf32, #tpu.memory_space<vmem>>, vector<48x128xf32>
    %cst_14 = arith.constant dense<0.000000e+00> : vector<16x128xf32>
    %17 = tpu.matmul %7, %16, %cst_14 {dimension_numbers = #tpu.dot_dimension_numbers<[1], [0], [0], [1], [0, 0, 1, 1], [], []>, precision = #tpu.contract_precision<fp32>} : vector<16x48xf32>, vector<48x128xf32>, vector<16x128xf32> -> vector<16x128xf32>
    %c0_15 = arith.constant 0 : index
    %c0_16 = arith.constant 0 : index
    %18 = vector.load %arg7[%c0_15, %c0_16] : memref<32x64xf32, #tpu.memory_space<vmem>>, vector<32x64xf32>
    %19 = tpu.transpose %15, [1, 0] : vector<16x32xf32> -> vector<32x16xf32>
    %20 = tpu.concatenate %19, %19, %19, %19 in 1 : vector<32x16xf32>, vector<32x16xf32>, vector<32x16xf32>, vector<32x16xf32> -> vector<32x64xf32>
    %21 = arith.mulf %20, %18 : vector<32x64xf32>
    %cst_17 = arith.constant dense<0.000000e+00> : vector<8x64xf32>
    %22 = tpu.matmul %11, %21, %cst_17 {dimension_numbers = #tpu.dot_dimension_numbers<[1], [0], [0], [1], [0, 0, 1, 1], [], []>, precision = #tpu.contract_precision<fp32>} : vector<8x32xf32>, vector<32x64xf32>, vector<8x64xf32> -> vector<8x64xf32>
    %cst_18 = arith.constant 0.000000e+00 : f32
    %23 = vector.broadcast %cst_18 : f32 to vector<8x32xf32>
    %24 = vector.broadcast %3 : vector<1x32xf32> to vector<8x32xf32>
    %25 = arith.addf %23, %24 : vector<8x32xf32>
    %cst_19 = arith.constant 0.000000e+00 : f32
    %26 = vector.broadcast %cst_19 : f32 to vector<8x16xf32>
    %27 = vector.extract_strided_slice %22 {offsets = [0, 0], sizes = [8, 16], strides = [1, 1]} : vector<8x64xf32> to vector<8x16xf32>
    %cst_20 = arith.constant dense<0xFF800000> : vector<8xf32>
    %28 = vector.multi_reduction <maximumf>, %27, %cst_20 [1] : vector<8x16xf32> to vector<8xf32>
    %29 = vector.shape_cast %28 : vector<8xf32> to vector<8x1xf32>
    %30 = vector.broadcast %29 : vector<8x1xf32> to vector<8x16xf32>
    %31 = arith.subf %27, %30 : vector<8x16xf32>
    %32 = math.exp %31 : vector<8x16xf32>
    %cst_21 = arith.constant dense<0.000000e+00> : vector<8xf32>
    %33 = vector.multi_reduction <add>, %32, %cst_21 [1] : vector<8x16xf32> to vector<8xf32>
    %34 = vector.shape_cast %33 : vector<8xf32> to vector<8x1xf32>
    %35 = vector.broadcast %34 : vector<8x1xf32> to vector<8x16xf32>
    %36 = arith.divf %32, %35 : vector<8x16xf32>
    %37 = arith.addf %26, %36 : vector<8x16xf32>
    %38 = vector.extract_strided_slice %17 {offsets = [0, 0], sizes = [16, 32], strides = [1, 1]} : vector<16x128xf32> to vector<16x32xf32>
    %cst_22 = arith.constant dense<0.000000e+00> : vector<8x32xf32>
    %39 = tpu.matmul %36, %38, %cst_22 {dimension_numbers = #tpu.dot_dimension_numbers<[1], [0], [0], [1], [0, 0, 1, 1], [], []>, precision = #tpu.contract_precision<fp32>} : vector<8x16xf32>, vector<16x32xf32>, vector<8x32xf32> -> vector<8x32xf32>
    %40 = arith.addf %25, %39 : vector<8x32xf32>
    %41 = vector.extract_strided_slice %22 {offsets = [0, 16], sizes = [8, 16], strides = [1, 1]} : vector<8x64xf32> to vector<8x16xf32>
    %cst_23 = arith.constant dense<0xFF800000> : vector<8xf32>
    %42 = vector.multi_reduction <maximumf>, %41, %cst_23 [1] : vector<8x16xf32> to vector<8xf32>
    %43 = vector.shape_cast %42 : vector<8xf32> to vector<8x1xf32>
    %44 = vector.broadcast %43 : vector<8x1xf32> to vector<8x16xf32>
    %45 = arith.subf %41, %44 : vector<8x16xf32>
    %46 = math.exp %45 : vector<8x16xf32>
    %cst_24 = arith.constant dense<0.000000e+00> : vector<8xf32>
    %47 = vector.multi_reduction <add>, %46, %cst_24 [1] : vector<8x16xf32> to vector<8xf32>
    %48 = vector.shape_cast %47 : vector<8xf32> to vector<8x1xf32>
    %49 = vector.broadcast %48 : vector<8x1xf32> to vector<8x16xf32>
    %50 = arith.divf %46, %49 : vector<8x16xf32>
    %51 = arith.addf %37, %50 : vector<8x16xf32>
    %52 = vector.extract_strided_slice %17 {offsets = [0, 32], sizes = [16, 32], strides = [1, 1]} : vector<16x128xf32> to vector<16x32xf32>
    %cst_25 = arith.constant dense<0.000000e+00> : vector<8x32xf32>
    %53 = tpu.matmul %50, %52, %cst_25 {dimension_numbers = #tpu.dot_dimension_numbers<[1], [0], [0], [1], [0, 0, 1, 1], [], []>, precision = #tpu.contract_precision<fp32>} : vector<8x16xf32>, vector<16x32xf32>, vector<8x32xf32> -> vector<8x32xf32>
    %54 = arith.addf %40, %53 : vector<8x32xf32>
    %55 = vector.extract_strided_slice %22 {offsets = [0, 32], sizes = [8, 16], strides = [1, 1]} : vector<8x64xf32> to vector<8x16xf32>
    %cst_26 = arith.constant dense<0xFF800000> : vector<8xf32>
    %56 = vector.multi_reduction <maximumf>, %55, %cst_26 [1] : vector<8x16xf32> to vector<8xf32>
    %57 = vector.shape_cast %56 : vector<8xf32> to vector<8x1xf32>
    %58 = vector.broadcast %57 : vector<8x1xf32> to vector<8x16xf32>
    %59 = arith.subf %55, %58 : vector<8x16xf32>
    %60 = math.exp %59 : vector<8x16xf32>
    %cst_27 = arith.constant dense<0.000000e+00> : vector<8xf32>
    %61 = vector.multi_reduction <add>, %60, %cst_27 [1] : vector<8x16xf32> to vector<8xf32>
    %62 = vector.shape_cast %61 : vector<8xf32> to vector<8x1xf32>
    %63 = vector.broadcast %62 : vector<8x1xf32> to vector<8x16xf32>
    %64 = arith.divf %60, %63 : vector<8x16xf32>
    %65 = arith.addf %51, %64 : vector<8x16xf32>
    %66 = vector.extract_strided_slice %17 {offsets = [0, 64], sizes = [16, 32], strides = [1, 1]} : vector<16x128xf32> to vector<16x32xf32>
    %cst_28 = arith.constant dense<0.000000e+00> : vector<8x32xf32>
    %67 = tpu.matmul %64, %66, %cst_28 {dimension_numbers = #tpu.dot_dimension_numbers<[1], [0], [0], [1], [0, 0, 1, 1], [], []>, precision = #tpu.contract_precision<fp32>} : vector<8x16xf32>, vector<16x32xf32>, vector<8x32xf32> -> vector<8x32xf32>
    %68 = arith.addf %54, %67 : vector<8x32xf32>
    %69 = vector.extract_strided_slice %22 {offsets = [0, 48], sizes = [8, 16], strides = [1, 1]} : vector<8x64xf32> to vector<8x16xf32>
    %cst_29 = arith.constant dense<0xFF800000> : vector<8xf32>
    %70 = vector.multi_reduction <maximumf>, %69, %cst_29 [1] : vector<8x16xf32> to vector<8xf32>
    %71 = vector.shape_cast %70 : vector<8xf32> to vector<8x1xf32>
    %72 = vector.broadcast %71 : vector<8x1xf32> to vector<8x16xf32>
    %73 = arith.subf %69, %72 : vector<8x16xf32>
    %74 = math.exp %73 : vector<8x16xf32>
    %cst_30 = arith.constant dense<0.000000e+00> : vector<8xf32>
    %75 = vector.multi_reduction <add>, %74, %cst_30 [1] : vector<8x16xf32> to vector<8xf32>
    %76 = vector.shape_cast %75 : vector<8xf32> to vector<8x1xf32>
    %77 = vector.broadcast %76 : vector<8x1xf32> to vector<8x16xf32>
    %78 = arith.divf %74, %77 : vector<8x16xf32>
    %79 = arith.addf %65, %78 : vector<8x16xf32>
    %80 = vector.extract_strided_slice %17 {offsets = [0, 96], sizes = [16, 32], strides = [1, 1]} : vector<16x128xf32> to vector<16x32xf32>
    %cst_31 = arith.constant dense<0.000000e+00> : vector<8x32xf32>
    %81 = tpu.matmul %78, %80, %cst_31 {dimension_numbers = #tpu.dot_dimension_numbers<[1], [0], [0], [1], [0, 0, 1, 1], [], []>, precision = #tpu.contract_precision<fp32>} : vector<8x16xf32>, vector<16x32xf32>, vector<8x32xf32> -> vector<8x32xf32>
    %82 = arith.addf %68, %81 : vector<8x32xf32>
    %cst_32 = arith.constant 2.500000e-01 : f32
    %83 = vector.broadcast %cst_32 : f32 to vector<8x16xf32>
    %84 = arith.mulf %79, %83 : vector<8x16xf32>
    %c0_33 = arith.constant 0 : index
    %c0_34 = arith.constant 0 : index
    %c0_35 = arith.constant 0 : index
    %85 = vector.load %arg8[%c0_33, %c0_34, %c0_35] : memref<1x8x32xf32, #tpu.memory_space<vmem>>, vector<1x8x32xf32>
    %86 = vector.shape_cast %85 : vector<1x8x32xf32> to vector<8x32xf32>
    %87 = vector.shape_cast %82 : vector<8x32xf32> to vector<1x8x32xf32>
    tpu.vector_store %arg8[%c0_33, %c0_34, %c0_35], %87 {strides = array<i32>} : memref<1x8x32xf32, #tpu.memory_space<vmem>>, vector<1x8x32xf32>,
    %c0_36 = arith.constant 0 : index
    %c0_37 = arith.constant 0 : index
    %c0_38 = arith.constant 0 : index
    %88 = vector.load %arg9[%c0_36, %c0_37, %c0_38] : memref<1x8x16xf32, #tpu.memory_space<vmem>>, vector<1x8x16xf32>
    %89 = vector.shape_cast %88 : vector<1x8x16xf32> to vector<8x16xf32>
    %90 = vector.shape_cast %84 : vector<8x16xf32> to vector<1x8x16xf32>
    tpu.vector_store %arg9[%c0_36, %c0_37, %c0_38], %90 {strides = array<i32>} : memref<1x8x16xf32, #tpu.memory_space<vmem>>, vector<1x8x16xf32>,
    return
  }
  func.func @transform_0(%arg0: i32) -> (i32, i32, i32) {
    %c0_i32 = arith.constant 0 : i32
    %c0_i32_0 = arith.constant 0 : i32
    %c0_i32_1 = arith.constant 0 : i32
    return %arg0, %c0_i32, %c0_i32_0 : i32, i32, i32
  }
  func.func @transform_1(%arg0: i32) -> (i32, i32, i32) {
    %c0_i32 = arith.constant 0 : i32
    %c0_i32_0 = arith.constant 0 : i32
    %c0_i32_1 = arith.constant 0 : i32
    return %arg0, %c0_i32, %c0_i32_0 : i32, i32, i32
  }
  func.func @transform_2(%arg0: i32) -> (i32, i32) {
    %c0_i32 = arith.constant 0 : i32
    %c0_i32_0 = arith.constant 0 : i32
    %c0_i32_1 = arith.constant 0 : i32
    return %c0_i32, %c0_i32_0 : i32, i32
  }
  func.func @transform_3(%arg0: i32) -> (i32, i32) {
    %c0_i32 = arith.constant 0 : i32
    %c0_i32_0 = arith.constant 0 : i32
    %c0_i32_1 = arith.constant 0 : i32
    return %c0_i32, %c0_i32_0 : i32, i32
  }
  func.func @transform_4(%arg0: i32) -> (i32, i32) {
    %c0_i32 = arith.constant 0 : i32
    %c0_i32_0 = arith.constant 0 : i32
    %c0_i32_1 = arith.constant 0 : i32
    return %c0_i32, %c0_i32_0 : i32, i32
  }
  func.func @transform_5(%arg0: i32) -> (i32, i32) {
    %c0_i32 = arith.constant 0 : i32
    %c0_i32_0 = arith.constant 0 : i32
    %c0_i32_1 = arith.constant 0 : i32
    return %c0_i32, %c0_i32_0 : i32, i32
  }
  func.func @transform_6(%arg0: i32) -> (i32, i32) {
    %c0_i32 = arith.constant 0 : i32
    %c0_i32_0 = arith.constant 0 : i32
    %c0_i32_1 = arith.constant 0 : i32
    return %c0_i32, %c0_i32_0 : i32, i32
  }
  func.func @transform_7(%arg0: i32) -> (i32, i32, i32) {
    %c0_i32 = arith.constant 0 : i32
    %c0_i32_0 = arith.constant 0 : i32
    %c0_i32_1 = arith.constant 0 : i32
    return %arg0, %c0_i32, %c0_i32_0 : i32, i32, i32
  }
  func.func @transform_8(%arg0: i32) -> (i32, i32, i32) {
    %c0_i32 = arith.constant 0 : i32
    %c0_i32_0 = arith.constant 0 : i32
    %c0_i32_1 = arith.constant 0 : i32
    return %arg0, %c0_i32, %c0_i32_0 : i32, i32, i32
  }
}

</mosaic_0001>

<bundles_post_ra>
// kernel: tpu_custom_call.1
= control target key start
LH: loop header
LB: loop body
LE: loop exit
PB: predicated region body
PF: predicated region fallthrough
CT: control target
= control target key end

     0   :  { %s6939_s0 = inlined_call_operand.hbm [shape: f32[2,8,32], index: 0, kind: input, shape index: {}]   ;;  %s6940_s1 = inlined_call_operand.vmem [shape: f32[2,16,48], index: 1, kind: input, shape index: {}]   ;;  %s6941_s2 = inlined_call_operand.hbm [shape: f32[32,32], index: 2, kind: input, shape index: {}]   ;;  %s6942_s3 = inlined_call_operand.vmem [shape: f32[48,32], index: 3, kind: input, shape index: {}]   ;;  %s6943_s4 = inlined_call_operand.vmem [shape: f32[48,128], index: 4, kind: input, shape index: {}]   ;;  %s6944_s5 = inlined_call_operand.vmem [shape: f32[3,32], index: 5, kind: input, shape index: {}]   ;;  %s6945_s6 = inlined_call_operand.hbm [shape: f32[32,64], index: 6, kind: input, shape index: {}]   ;;  %s6946_s7 = inlined_call_operand.hbm [shape: f32[2,8,32], index: 7, kind: output, shape index: {0}]   ;;  %s6947_s8 = inlined_call_operand.hbm [shape: f32[2,8,16], index: 8, kind: output, shape index: {1}]  }
   0x1   :  { %6951 = sst [smem:[#allocation15_spill]] %s6939_s0 }
   0x2   :  { %14 = vsyncpa [#allocation3], 0 }
   0x3   :  { %16 = vsyncpa [#allocation3 + $0x1], 0 }
   0x4   :  { %17 = vsyncpa [#allocation6], 0 }
   0x5   :  { %18 = vsyncpa [#allocation4], 0 }
   0x6   :  { %20 = vsyncpa [#allocation4 + $0x1], 0 }
   0x7   :  { %21 = vsyncpa [#allocation10], 0 }
   0x8   :  { %23 = vsyncpa [#allocation10 + $0x1], 0  ;;  %s6171_s27 = smov 0   ;;  %s6173_s28 = smov 0  }
   0x9   :  { %s6175_s29 = smov 0   ;;  %s6177_s30 = smov 0  }
   0xa LB: > { %s6192_s9 = sadd.s32 4294967295, %s6107_s30   ;;  %s4711_s10 = sadd.s32 4294967294, %s6107_s30   ;;  %s6107_s30 = sphi %s6177_s30, %s6970_s30   ;;  %s6103_s29 = sphi %s6175_s29, %s6969_s29   ;;  %s6099_s28 = sphi %s6173_s28, %s6968_s28   ;;  %s6095_s27 = sphi %s6171_s27, %s6967_s27  }
   0xb   : > { %p49_p0 = scmp.ne.s32.totalorder %s6099_s28, %s6095_s27  ;;  %p6948_p1 = scmp.eq.s32.totalorder %s6192_s9, 0 }
   0xc   : > { %p210_p3 = scmp.eq.s32.totalorder %s4711_s10, 1  ;;  %p4712_p5 = scmp.ge.s32.totalorder %s6107_s30, 1 }
   0xd   : > { %p6201_p4 = por %p6948_p1, %p49_p0  ;;  %p243_p7 = scmp.lt.s32.totalorder %s6107_s30, 3 }
   0xe   : > { %p6206_p6 = por %p210_p3, %p49_p0  ;;  %s6109_s14 = smov [#allocation5]  }
   0xf   : > { %s6952_s11 = scalar_select %p6201_p4, 1, 0 }
  0x10   : > { %s6953_s12 = scalar_select %p6206_p6, 1, 0 }
  0x11   : > { %p6211_p8 = pnand %p4712_p5, %p243_p7  ;;  %s255_s15 = sshll.u32 %s6109_s14, 4  ;;  %s6215_s15 = int_to_ptr.vmem [resolvable:$true] %s255_s15 }
  0x12   : > { %s6110_s17 = smov [#allocation7]   ;;  %s5919_s21 = scalar_lea.hbm %s6941_s2, 512 }
  0x13   : > { %p5833_p9 = pneg %p6211_p8  ;;  %s277_s18 = sshll.u32 %s6110_s17, 4  ;;  %s6226_s18 = int_to_ptr.vmem [resolvable:$true] %s277_s18 }
  0x14   : > { %p5920_p12 = scmp.ne.s32.totalorder %s6941_s2, %s5919_s21  ;;  %p5926_p5 = scmp.lt.u32.totalorder %s5919_s21, %s6941_s2 }
  0x15   : > { %p6222_p11 = pnand %p5833_p9, %p6948_p1 }
  0x17   : > { %p5921_p13 = pneg %p6222_p11 }
  0x19   : > { %p5922_p0 = pnand %p5921_p13, %p5920_p12 }
  0x1b   : > { %p5923_p3 = pneg %p5922_p0 }
  0x1d   : > { %p5928_p7 = pnand %p5926_p5, %p5923_p3 }
  0x1f   : > { %5931 = shalt.err (!%p5928_p7)
}
  0x20   : > { %s5932_s26 = scalar_lea.vmem %s6215_s15, 512  ;;  %p5940_p2 = scmp.lt.s32.totalorder %s6215_s15, %s6215_s15 }
  0x21   : > { %p5933_p9 = scmp.ne.s32.totalorder %s6215_s15, %s5932_s26  ;;  %p5941_p12 = scmp.lt.s32.totalorder %s5932_s26, %s5932_s26 }
  0x23   : > { %p5935_p10 = pnand %p5933_p9, %p5921_p13  ;;  %p5942_p0 = por %p5941_p12, %p5940_p2 }
  0x25   : > { %p5936_p1 = pneg %p5935_p10 }
  0x27   : > { %p5943_p6 = pnand %p5942_p0, %p5936_p1 }
  0x29   : > { %5946 = shalt.err (!%p5943_p6)
}
  0x2a   : > { %s6111_s10 = smov 128   ;;  %s6112_s14 = smov 8  }
  0x2b   : > { %5836 = dma.hbm_to_vmem [thread:$0]  (!%p6222_p11), %s6941_s2, 512, %s6215_s15, [#allocation6], %s6111_s10, %s6111_s10, %s6112_s14  }
  0x2c   : > { %s5947_s22 = scalar_lea.hbm %s6945_s6, 512 }
  0x2d   : > { %p5948_p2 = scmp.ne.s32.totalorder %s6945_s6, %s5947_s22  ;;  %p5954_p10 = scmp.lt.u32.totalorder %s5947_s22, %s6945_s6 }
  0x2f   : > { %p5950_p1 = pnand %p5948_p2, %p5921_p13 }
  0x31   : > { %p5951_p6 = pneg %p5950_p1 }
  0x33   : > { %p5956_p3 = pnand %p5954_p10, %p5951_p6 }
  0x35   : > { %5959 = shalt.err (!%p5956_p3)
}
  0x36   : > { %s5960_s15 = scalar_lea.vmem %s6226_s18, 512  ;;  %p5968_p12 = scmp.lt.s32.totalorder %s6226_s18, %s6226_s18 }
  0x37   : > { %p5961_p5 = scmp.ne.s32.totalorder %s6226_s18, %s5960_s15  ;;  %p5969_p0 = scmp.lt.s32.totalorder %s5960_s15, %s5960_s15 }
  0x39   : > { %p5963_p7 = pnand %p5961_p5, %p5921_p13  ;;  %p5970_p2 = por %p5969_p0, %p5968_p12 }
  0x3b   : > { %p5964_p9 = pneg %p5963_p7 }
  0x3d   : > { %p5971_p1 = pnand %p5970_p2, %p5964_p9 }
  0x3f   : > { %5974 = shalt.err (!%p5971_p1)
}
  0x40   : > { %5839 = dma.hbm_to_vmem [thread:$0]  (!%p6222_p11), %s6945_s6, 512, %s6226_s18, [#allocation6], %s6111_s10, %s6111_s10, %s6112_s14  }
  0x41   : > { %s6281_s20 = sadd.s32 1, %s6107_s30   ;;  %s36_s16 = sadd.s32 1, %s6103_s29 }
  0x42   : > { %s33_s21 = ssub.s32 %s6107_s30, %s6281_s20  ;;  %p43_p13 = scmp.ne.s32.totalorder %s6103_s29, %s6099_s28 }
  0x43   : > { %p34_p6 = scmp.eq.s32.totalorder %s33_s21, 0  ;;  %p44_p10 = scmp.eq.s32.totalorder %s6107_s30, 0 }
  0x44   : > { %p6956_p3 = scmp.eq.s32.totalorder %s6192_s9, 1  ;;  %p5853_p7 = scmp.lt.s32.totalorder %s6107_s30, 2 }
  0x45   : > { %s6297_s23 = scalar_select %p34_p6, %s6103_s29, %s36_s16  }
  0x46   : > { %p6291_p5 = por %p6956_p3, %p43_p13  ;;  %p45_p9 = por %p44_p10, %p43_p13 }
  0x47   : > { %s291_s24 = sand.u32 1, %s6103_s29   ;;  %s4717_s18 = sshll.u32 %s6107_s30, 7 }
  0x48   : > { %s6957_s22 = scalar_select %p6291_p5, 1, 0 }
  0x49   : > { %s4716_s25 = sshll.u32 %s291_s24, 3  ;;  %s6958_s0 = sld [smem:[#allocation15_spill]] }
  0x4a   : > { %s295_s15 = scalar_lea.vmem [#allocation2], %s4716_s25  ;;  %p6308_p11 = pnand %p5853_p7, %p45_p9 }
  0x4b   : > { %s302_s17 = sshll.u32 %s295_s15, 4  ;;  %s292_s16 = scalar_lea.sflag [#allocation3], %s291_s24  ;;  %s6306_s17 = int_to_ptr.vmem [resolvable:$true] %s302_s17 }
  0x4c   : > { %p5977_p0 = pneg %p6308_p11 }
  0x4f   : > { %s6304_s26 = scalar_lea.hbm %s6958_s0, %s4717_s18  ;;  %s5980_s10 = scalar_lea.hbm %s6958_s0, 256 }
  0x50   : > { %s5975_s21 = scalar_lea.hbm %s6304_s26, 128  ;;  %p5981_p13 = scmp.lt.u32.totalorder %s6304_s26, %s6958_s0 }
  0x51   : > { %p5976_p12 = scmp.ne.s32.totalorder %s6304_s26, %s5975_s21  ;;  %p5982_p6 = scmp.lt.u32.totalorder %s5980_s10, %s5975_s21 }
  0x52   : > { %p5984_p3 = scmp.lt.u32.totalorder %s5975_s21, %s6304_s26 }
  0x53   : > { %p5978_p2 = pnand %p5977_p0, %p5976_p12  ;;  %p5983_p10 = por %p5982_p6, %p5981_p13 }
  0x55   : > { %p5979_p1 = pneg %p5978_p2  ;;  %p5985_p7 = por %p5984_p3, %p5983_p10 }
  0x57   : > { %p5986_p9 = pnand %p5985_p7, %p5979_p1 }
  0x59   : > { %5989 = shalt.err (!%p5986_p9)
}
  0x5a   : > { %s5990_s24 = scalar_lea.vmem %s6306_s17, 128  ;;  %s6113_s18 = smov [#allocation2]  }
  0x5b   : > { %p5991_p12 = scmp.ne.s32.totalorder %s6306_s17, %s5990_s24  ;;  %s5995_s25 = sshll.u32 %s6113_s18, 4  ;;  %s5996_s25 = int_to_ptr.vmem [resolvable:$false] %s5995_s25 }
  0x5c   : > { %s5997_s14 = scalar_lea.vmem %s5996_s25, 256  ;;  %p5998_p4 = scmp.lt.s32.totalorder %s6306_s17, %s5996_s25 }
  0x5d   : > { %p5993_p2 = pnand %p5991_p12, %p5977_p0  ;;  %p5999_p13 = scmp.lt.s32.totalorder %s5997_s14, %s5990_s24 }
  0x5f   : > { %p5994_p5 = pneg %p5993_p2  ;;  %p6000_p6 = por %p5999_p13, %p5998_p4 }
  0x61   : > { %p6001_p10 = pnand %p6000_p6, %p5994_p5 }
  0x63   : > { %6004 = shalt.err (!%p6001_p10)
}
  0x64   : > { %5843 = dma.hbm_to_vmem [thread:$0]  (!%p6308_p11), %s6304_s26, 128, %s6306_s17, %s292_s16  }
  0x65   : > { %319 = sbr.rel (%p6211_p8) target bundleno = 1923 (0x783), region = 48  ;;  %s6340_s21 = sand.u32 (!%p6211_p8), 1, %s6099_s28  }
  0x66   : > { %s6343_s10 = sshll.u32 (!%p6211_p8), %s6340_s21, 3  ;;  %s322_s15 = scalar_lea.sflag (!%p6211_p8), [#allocation3], %s6340_s21 }
  0x67   : > { %p6960_p4 = scmp.ne.s32.totalorder (!%p6211_p8), %s6952_s11, 0 }
  0x6c   : > { %6078 = dma.done.wait (%p6960_p4), %s322_s15, 128  }
  0x6d   : > { %6080 = vsyncadd (%p6960_p4), %s322_s15, 4294967168  ;;  %p6961_p5 = scmp.eq.s32.totalorder %s6192_s9, 0 }
  0x6f   : > { %6082 = dma.done.wait (%p6961_p5), [#allocation6], 1024   ;;  %p6962_p8 = pmov %p6961_p5 }
  0x70   : > { %p376_p11 = scmp.lt.s32.totalorder %s6192_s9, 1  ;;  %v6114_v0 = vmov 0.0|0.0   ;;  %vm6115_vm0 = vmmov 0   ;;  %v6116_v1 = vmov 0.0   ;;  %v882_v2 = vld [vmem:[%s6942_s3] sm:$0xff]  ;;  %v883_v3 = vld [vmem:[%s6942_s3 + $0x8] sm:$0xff] }
  0x71   : > { %6084 = vsyncadd (%p6962_p8), [#allocation6], 4294966272  ;;  %5441 = vmatprep.subr.bf16.mxu0 %v6114_v0  ;;  %4969 = vmatprep.mubr.msk.f32.mxu0 %vm6115_vm0, %v6116_v1  ;;  %v884_v4 = vld [vmem:[%s6942_s3 + $0x10] sm:$0xff]  ;;  %vm892_vm1 = vcmask 392192   ;;  %v900_v5 = vand.u32 4294901760, %v882_v2  ;;  %v903_v6 = vand.u32 4294901760, %v883_v3 }
  0x72   : > { %s377_s13 = scalar_select %p376_p11, %s6192_s9, 1  ;;  %v885_v7 = vld [vmem:[%s6942_s3 + $0x18] sm:$0xff]  ;;  %v906_v8 = vand.u32 4294901760, %v884_v4  ;;  %v886_v9 = vld [vmem:[%s6942_s3 + $0x20] sm:$0xff]  ;;  %v887_v10 = vld [vmem:[%s6942_s3 + $0x28] sm:$0xff]  ;;  %vm393_vm2 = vcmask 261120  }
  0x73   : > { %v909_v11 = vand.u32 4294901760, %v885_v7  ;;  %v912_v12 = vand.u32 4294901760, %v886_v9  ;;  %v915_v13 = vand.u32 4294901760, %v887_v10  ;;  %v6381_v16 = vpack.c.bf16 %v903_v6, %v900_v5  ;;  %v385_v51 = vld [vmem:[#allocation5] sm:$0xff]  ;;  %v386_v54 = vld [vmem:[#allocation5 + $0x8] sm:$0xff]  ;;  %v387_v55 = vld [vmem:[#allocation5 + $0x10] sm:$0xff] }
  0x74   : > { %s4732_s11 = sshll.u32 %s377_s13, 4  ;;  %v6384_v18 = vsub.f32 %v882_v2, %v900_v5  ;;  %v6386_v19 = vsub.f32 %v883_v3, %v903_v6  ;;  %v6400_v27 = vsub.f32 %v884_v4, %v906_v8  ;;  %v388_v56 = vld [vmem:[#allocation5 + $0x18] sm:$0xff]  ;;  %s6963_s0 = scalar_lea.vmem [#allocation2], %s6343_s10  ;;  %v398_v61 = vand.u32 4294901760, %v385_v51 }
  0x75   : > { %s380_s19 = scalar_lea.vmem %s6940_s1, %s4732_s11  ;;  %v6388_v20 = vpack.c.bf16 %v909_v11, %v906_v8  ;;  %v6390_v21 = vpack.c.bf16 %v915_v13, %v912_v12  ;;  %5478 = vmatprep.subr.bf16.mxu1 %v6381_v16  ;;  %v6406_v29 = vsub.f32 %v885_v7, %v909_v11  ;;  %v6408_v30 = vsub.f32 %v886_v9, %v912_v12  ;;  %v382_v58 = vld [vmem:[%s6963_s0] sm:$0xff]  ;;  %s6117_s18 = smov 32  }
  0x76   : > { %v383_v14 = vld [vmem:[%s380_s19] sm:$0xff]  ;;  %v384_v15 = vld [vmem:[%s380_s19 + $0x8] sm:$0xff]  ;;  %v993_v24 = vand.u32 4294901760, %v6384_v18  ;;  %v1000_v25 = vand.u32 4294901760, %v6386_v19  ;;  %5480 = vmatpush3.bf16.msra.mxu1 %v6381_v16  ;;  %v6410_v31 = vsub.f32 %v887_v10, %v915_v13  ;;  %v1007_v35 = vand.u32 4294901760, %v6400_v27  ;;  %s6118_s25 = smov 16  }
  0x77   : > { %v894_v17 = vsel %vm892_vm1, %v383_v14, 0  ;;  %v897_v23 = vsel %vm892_vm1, %v384_v15, 0  ;;  %5482 = vmatprep.subr.bf16.mxu1 %v6388_v20  ;;  %v1014_v37 = vand.u32 4294901760, %v6406_v29  ;;  %v1021_v38 = vand.u32 4294901760, %v6408_v30  ;;  %s6119_s14 = smov 48   ;;  %s6120_s15 = smov 96  }
  0x78   : > { %v6392_v22 = vand.u32 4294901760, %v894_v17  ;;  %v6398_v26 = vand.u32 4294901760, %v897_v23  ;;  %v994_v32 = vsub.f32 %v6384_v18, %v993_v24  ;;  %v1001_v33 = vsub.f32 %v6386_v19, %v1000_v25  ;;  %s6121_s13 = smov 112   ;;  %s6122_s11 = smov 80  }
  0x79   : > { %v1028_v39 = vand.u32 4294901760, %v6410_v31  ;;  %v1008_v43 = vsub.f32 %v6400_v27, %v1007_v35  ;;  %v1015_v45 = vsub.f32 %v6406_v29, %v1014_v37  ;;  %v1022_v46 = vsub.f32 %v6408_v30, %v1021_v38  ;;  %s6123_s26 = smov 64   ;;  %s375_s17 = scalar_lea.vmem [#allocation9], %s6343_s10 }
  0x7a   : > { %v6404_v28 = vsub.f32 %v894_v17, %v6392_v22  ;;  %v6420_v34 = vsub.f32 %v897_v23, %v6398_v26  ;;  %v995_v40 = vand.u32 4294901760, %v994_v32  ;;  %v1002_v41 = vand.u32 4294901760, %v1001_v33  ;;  %5484 = vmatpush3.bf16.msra.mxu1 %v6388_v20  ;;  %s4728_s16 = sshll.u32 %s6192_s9, 7  ;;  %p6964_p1 = scmp.ne.s32.totalorder %s6957_s22, 0 }
  0x7b   : > { %v1029_v47 = vsub.f32 %v6410_v31, %v1028_v39  ;;  %5486 = vmatprep.subr.bf16.mxu1 %v6390_v21  ;;  %v1009_v50 = vand.u32 4294901760, %v1008_v43  ;;  %v1016_v53 = vand.u32 4294901760, %v1015_v45  ;;  %v1023_v59 = vand.u32 4294901760, %v1022_v46  ;;  %s6864_s19 = scalar_lea.hbm %s6947_s8, %s4728_s16 }
  0x7c   : > { %v6424_v36 = vand.u32 4294901760, %v6404_v28  ;;  %v6430_v42 = vand.u32 4294901760, %v6420_v34  ;;  %v5489_v48 = vpack.c.bf16 %v1002_v41, %v995_v40  ;;  %v401_v63 = vand.u32 4294901760, %v386_v54 }
  0x7d   : > { %v1030_v60 = vand.u32 4294901760, %v1029_v47  ;;  %v5493_v62 = vpack.c.bf16 %v1016_v53, %v1009_v50  ;;  %v404_v2 = vand.u32 4294901760, %v387_v55  ;;  %v407_v3 = vand.u32 4294901760, %v388_v56 }
  0x7e   : > { %v973_v44 = vsub.f32 %v6404_v28, %v6424_v36  ;;  %v983_v49 = vsub.f32 %v6420_v34, %v6430_v42  ;;  %5488 = vmatpush3.bf16.msra.mxu1 %v6390_v21  ;;  %v6458_v4 = vsub.f32 %v385_v51, %v398_v61  ;;  %v395_v5 = vsel %vm393_vm2, %v382_v58, 0 }
  0x7f   : > { %5490 = vmatprep.subr.bf16.mxu1 %v5489_v48  ;;  %v6462_v6 = vpack.c.bf16 %v401_v63, %v398_v61  ;;  %v6464_v7 = vsub.f32 %v386_v54, %v401_v63  ;;  %v6466_v8 = vsub.f32 %v387_v55, %v404_v2  ;;  %v6469_v9 = vsub.f32 %v388_v56, %v407_v3 }
  0x80   : > { %v6450_v52 = vand.u32 4294901760, %v973_v44  ;;  %v6452_v57 = vand.u32 4294901760, %v983_v49  ;;  %v6471_v10 = vand.u32 4294901760, %v395_v5  ;;  %v479_v11 = vand.u32 4294901760, %v6458_v4 }
  0x81   : > { %v5497_v12 = vpack.c.bf16 %v1030_v60, %v1023_v59  ;;  %5443 = vmatpush3.bf16.msra.mxu0 %v6462_v6  ;;  %v6475_v13 = vpack.c.bf16 %v407_v3, %v404_v2  ;;  %v486_v14 = vand.u32 4294901760, %v6464_v7  ;;  %v493_v15 = vand.u32 4294901760, %v6466_v8  ;;  %v1457_v2 = vld [vmem:[%s6943_s4 + $0x20] sm:$0xff]  ;;  %v1458_v3 = vld [vmem:[%s6943_s4 + $0x28] sm:$0xff] }
  0x82   : > { %5039 = vmatprep.mubr.f32.mxu1 %v6450_v52  ;;  %5444 = vmatprep.subr.bf16.mxu0 %v6114_v0  ;;  %v6481_v17 = vsub.f32 %v395_v5, %v6471_v10  ;;  %v480_v23 = vsub.f32 %v6458_v4, %v479_v11  ;;  %v500_v32 = vand.u32 4294901760, %v6469_v9  ;;  %v5501_v45 = vpack.c.bf16 %v6386_v19, %v6384_v18 }
  0x83   : > { %5040 = vmatmul.mubr.f32.vlgmr.msra.gmra.mrb[0].mxu1 %v6452_v57  ;;  %v487_v33 = vsub.f32 %v6464_v7, %v486_v14  ;;  %v494_v40 = vsub.f32 %v6466_v8, %v493_v15  ;;  %v5505_v53 = vpack.c.bf16 %v6406_v29, %v6400_v27  ;;  %v5509_v55 = vpack.c.bf16 %v6410_v31, %v6408_v30  ;;  %v6590_v27 = vld [vmem:[%s6944_s5] sm:$0x7] }
  0x84   : > { %5492 = vmatpush3.bf16.msra.mxu1 %v5489_v48  ;;  %5054 = vmatprep.mubr.f32.mxu1 %v6392_v22  ;;  %v468_v41 = vand.u32 4294901760, %v6481_v17  ;;  %v481_v43 = vand.u32 4294901760, %v480_v23  ;;  %v501_v44 = vsub.f32 %v6469_v9, %v500_v32  ;;  %v5454_v56 = vpack.c.bf16 %v6464_v7, %v6458_v4 }
  0x85   : > { %5494 = vmatprep.subr.bf16.mxu1 %v5493_v62  ;;  %5446 = vmatpush3.bf16.msra.mxu0 %v6475_v13  ;;  %v488_v46 = vand.u32 4294901760, %v487_v33  ;;  %v495_v49 = vand.u32 4294901760, %v494_v40  ;;  %v5525_v58 = vpack.c.bf16 %v1000_v25, %v993_v24  ;;  %v5529_v59 = vpack.c.bf16 %v1014_v37, %v1007_v35 }
  0x86   : > { %v469_v47 = vsub.f32 %v6481_v17, %v468_v41  ;;  %5447 = vmatprep.subr.bf16.mxu0 %v6114_v0  ;;  %v502_v50 = vand.u32 4294901760, %v501_v44  ;;  %v5533_v18 = vpack.c.bf16 %v1028_v39, %v1021_v38  ;;  %v5457_v19 = vpack.c.bf16 %v6469_v9, %v6466_v8  ;;  %v1453_v38 = vld [vmem:[%s6943_s4] sm:$0xff]  ;;  %v1454_v39 = vld [vmem:[%s6943_s4 + $0x8] sm:$0xff] }
  0x87   : > { %v5448_v48 = vpack.c.bf16 %v488_v46, %v481_v43  ;;  %v1460_v60 = vand.u32 4294901760, %v1453_v38  ;;  %v1463_v61 = vand.u32 4294901760, %v1454_v39  ;;  %v1472_v5 = vand.u32 4294901760, %v1457_v2 }
  0x88   : > { %5496 = vmatpush3.bf16.msra.mxu1 %v5493_v62  ;;  %v470_v51 = vand.u32 4294901760, %v469_v47  ;;  %v5451_v54 = vpack.c.bf16 %v502_v50, %v495_v49  ;;  %v1456_v62 = vld [vmem:[%s6943_s4 + $0x18] sm:$0xff]  ;;  %vm2089_vm3 = vcmask 130048   ;;  %vm3565_vm4 = vcmask 392448  }
  0x89   : > { %5498 = vmatprep.subr.bf16.mxu1 %v5497_v12  ;;  %v1469_v4 = vand.u32 4294901760, %v1456_v62  ;;  %v6611_v7 = vpack.c.bf16 %v1463_v61, %v1460_v60  ;;  %v1552_v8 = vsub.f32 %v1453_v38, %v1460_v60  ;;  %v1559_v9 = vsub.f32 %v1454_v39, %v1463_v61  ;;  %v2013_v39 = vld [vmem:[#allocation7] sm:$0xff]  ;;  %v2014_v61 = vld [vmem:[#allocation7 + $0x8] sm:$0xff] }
  0x8a   : > { %4970 = vmatmul.mubr.f32.vlgmr.msra.gmra.mrb[0].mxu0 %v470_v51  ;;  %vm3074_vm5 = vcmask 261248   ;;  %vm4054_vm6 = vcmask 523648  }
  0x8b   : > { %5449 = vmatpush3.bf16.msra.mxu0 %v5448_v48  ;;  %4980 = vmatprep.mubr.msk.f32.mxu0 %vm6115_vm0, %v6116_v1 }
  0x8c   : > { %5500 = vmatpush3.bf16.msra.mxu1 %v5497_v12  ;;  %5450 = vmatprep.subr.bf16.mxu0 %v6114_v0  ;;  %v1573_v12 = vsub.f32 %v1456_v62, %v1469_v4 }
  0x8d   : > { %5502 = vmatprep.subr.bf16.mxu1 %v5501_v45 }
  0x8e   : > { %v1574_v33 = vand.u32 4294901760, %v1573_v12 }
  0x8f   : > { %5055 = vmatmul.mubr.f32.vlgmr.msra.gmra.mrb[0].mxu1 %v6398_v26  ;;  %5452 = vmatpush3.bf16.msra.mxu0 %v5451_v54 }
  0x90   : > { %5504 = vmatpush3.bf16.msra.mxu1 %v5501_v45  ;;  %5069 = vmatprep.mubr.f32.mxu1 %v6404_v28  ;;  %v1575_v46 = vsub.f32 %v1573_v12, %v1574_v33 }
  0x91   : > { %5506 = vmatprep.subr.bf16.mxu1 %v5505_v53  ;;  %5453 = vmatprep.subr.bf16.mxu0 %v6114_v0 }
  0x92   : > { %4981 = vmatmul.mubr.f32.vlgmr.msra.gmra.mrb[0].mxu0 %v6471_v10 }
  0x93   : > { %5455 = vmatpush3.bf16.msra.mxu0 %v5454_v56  ;;  %4991 = vmatprep.mubr.msk.f32.mxu0 %vm6115_vm0, %v6116_v1 }
  0x94   : > { %5508 = vmatpush3.bf16.msra.mxu1 %v5505_v53  ;;  %5456 = vmatprep.subr.bf16.mxu0 %v6114_v0 }
  0x95   : > { %5510 = vmatprep.subr.bf16.mxu1 %v5509_v55 }
  0x97   : > { %5458 = vmatpush3.bf16.msra.mxu0 %v5457_v19 }
  0x98   : > { %5512 = vmatpush3.bf16.msra.mxu1 %v5509_v55  ;;  %5459 = vmatprep.subr.bf16.mxu0 %v6114_v0  ;;  %v1576_v55 = vand.u32 4294901760, %v1575_v46 }
  0x99   : > { %5514 = vmatprep.subr.bf16.mxu1 %v6381_v16 }
  0x9a   : > { %4992 = vmatmul.mubr.f32.vlgmr.msra.gmra.mrb[0].mxu0 %v6481_v17 }
  0x9b   : > { %5070 = vmatmul.mubr.f32.vlgmr.msra.gmra.mrb[0].mxu1 %v6420_v34  ;;  %5461 = vmatpush3.bf16.msra.mxu0 %v6462_v6 }
  0x9c   : > { %5516 = vmatpush3.bf16.msra.mxu1 %v6381_v16  ;;  %5084 = vmatprep.mubr.f32.mxu1 %v6424_v36 }
  0x9d   : > { %5518 = vmatprep.subr.bf16.mxu1 %v6388_v20  ;;  %5002 = vmatprep.mubr.msk.f32.mxu0 %vm6115_vm0, %v6116_v1 }
  0x9e   : > { %5462 = vmatprep.subr.bf16.mxu0 %v6114_v0 }
  0x9f   : > { %5464 = vmatpush3.bf16.msra.mxu0 %v6475_v13 }
  0xa0   : > { %5520 = vmatpush3.bf16.msra.mxu1 %v6388_v20  ;;  %5465 = vmatprep.subr.bf16.mxu0 %v6114_v0 }
  0xa1   : > { %5522 = vmatprep.subr.bf16.mxu1 %v6390_v21 }
  0xa2   : > { %5003 = vmatmul.mubr.f32.vlgmr.msra.gmra.mrb[0].mxu0 %v468_v41 }
  0xa3   : > { %5013 = vmatprep.mubr.msk.f32.mxu0 %vm6115_vm0, %v6116_v1 }
  0xa4   : > { %5524 = vmatpush3.bf16.msra.mxu1 %v6390_v21 }
  0xa5   : > { %5526 = vmatprep.subr.bf16.mxu1 %v5525_v58 }
  0xa7   : > { %5085 = vmatmul.mubr.f32.vlgmr.msra.gmra.mrb[0].mxu1 %v6430_v42 }
  0xa8   : > { %5528 = vmatpush3.bf16.msra.mxu1 %v5525_v58  ;;  %5099 = vmatprep.mubr.f32.mxu1 %v6392_v22 }
  0xa9   : > { %5530 = vmatprep.subr.bf16.mxu1 %v5529_v59 }
  0xac   : > { %5532 = vmatpush3.bf16.msra.mxu1 %v5529_v59 }
  0xad   : > { %5534 = vmatprep.subr.bf16.mxu1 %v5533_v18 }
  0xb0   : > { %5536 = vmatpush3.bf16.msra.mxu1 %v5533_v18 }
  0xb1   : > { %5538 = vmatprep.subr.bf16.mxu1 %v6381_v16 }
  0xb3   : > { %5100 = vmatmul.mubr.f32.vlgmr.msra.gmra.mrb[0].mxu1 %v6398_v26 }
  0xb4   : > { %5540 = vmatpush3.bf16.msra.mxu1 %v6381_v16  ;;  %5114 = vmatprep.mubr.f32.mxu1 %v6392_v22  ;;  %v5466_v16 = vpack.c.bf16 %v486_v14, %v479_v11  ;;  %v1553_v14 = vand.u32 4294901760, %v1552_v8 }
  0xb5   : > { %5542 = vmatprep.subr.bf16.mxu1 %v6388_v20 }
  0xb6   : > { %5467 = vmatpush3.bf16.msra.mxu0 %v5466_v16  ;;  %v1554_v41 = vsub.f32 %v1552_v8, %v1553_v14 }
  0xb7   : > { %5468 = vmatprep.subr.bf16.mxu0 %v6114_v0 }
  0xb8   : > { %5544 = vmatpush3.bf16.msra.mxu1 %v6388_v20  ;;  %v5469_v20 = vpack.c.bf16 %v500_v32, %v493_v15  ;;  %v1560_v15 = vand.u32 4294901760, %v1559_v9  ;;  %v1555_v49 = vand.u32 4294901760, %v1554_v41 }
  0xb9   : > { %5546 = vmatprep.subr.bf16.mxu1 %v6390_v21 }
  0xba   : > { %5470 = vmatpush3.bf16.msra.mxu0 %v5469_v20  ;;  %v1561_v43 = vsub.f32 %v1559_v9, %v1560_v15  ;;  %v5597_v47 = vpack.c.bf16 %v1560_v15, %v1553_v14  ;;  %v5573_v20 = vpack.c.bf16 %v1559_v9, %v1552_v8 }
  0xbb   : > { %5471 = vmatprep.subr.bf16.mxu0 %v6114_v0 }
  0xbc   : > { %5548 = vmatpush3.bf16.msra.mxu1 %v6390_v21  ;;  %v389_v21 = vlaneseq  ;;  %v1562_v50 = vand.u32 4294901760, %v1561_v43 }
  0xbd   : > { %5014 = vmatmul.mubr.f32.vlgmr.msra.gmra.mrb[0].mxu0 %v6471_v10  ;;  %5550 = vmatprep.subr.bf16.mxu1 %v6611_v7 }
  0xbe   : > { %5473 = vmatpush3.bf16.msra.mxu0 %v6462_v6  ;;  %5024 = vmatprep.mubr.msk.f32.mxu0 %vm6115_vm0, %v6116_v1  ;;  %v6584_v24 = vshrl.u32 %v389_v21, 7  ;;  %v1475_v6 = vand.u32 4294901760, %v1458_v3  ;;  %v5561_v53 = vpack.c.bf16 %v1562_v50, %v1555_v49  ;;  %v2016_v50 = vld [vmem:[#allocation7 + $0x18] sm:$0xff] }
  0xbf   : > { %5115 = vmatmul.mubr.f32.vlgmr.msra.gmra.mrb[0].mxu1 %v6398_v26  ;;  %5474 = vmatprep.subr.bf16.mxu0 %v6114_v0 }
  0xc0   : > { %5129 = vmatprep.mubr.f32.mxu1 %v6450_v52  ;;  %v890_v25 = vsub.s32 1, %v6584_v24  ;;  %v1455_v52 = vld [vmem:[%s6943_s4 + $0x10] sm:$0xff]  ;;  %v1587_v23 = vsub.f32 %v1458_v3, %v1475_v6  ;;  %5552 = vmatpush3.bf16.msra.mxu1 %v6611_v7  ;;  %v6617_v32 = vpack.c.bf16 %v1475_v6, %v1472_v5 }
  0xc1   : > { %v1466_v63 = vand.u32 4294901760, %v1455_v52 }
  0xc2   : > { %5476 = vmatpush3.bf16.msra.mxu0 %v6475_v13  ;;  %v891_v29 = vrot.slane %v6590_v27, %v890_v25  ;;  %v1580_v13 = vsub.f32 %v1457_v2, %v1472_v5  ;;  %v1588_v45 = vand.u32 4294901760, %v1587_v23 }
  0xc3   : > { %v6613_v11 = vpack.c.bf16 %v1469_v4, %v1466_v63  ;;  %5598 = vmatprep.subr.bf16.mxu0 %v5597_v47  ;;  %v391_v4 = vsub.s32 0, %v6584_v24 }
  0xc4   : > { %v1581_v40 = vand.u32 4294901760, %v1580_v13  ;;  %v1589_v56 = vsub.f32 %v1587_v23, %v1588_v45  ;;  %v5581_v21 = vpack.c.bf16 %v1587_v23, %v1580_v13 }
  0xc5   : > { %5025 = vmatmul.mubr.f32.vlgmr.msra.gmra.mrb[0].mxu0 %v6471_v10  ;;  %v1566_v10 = vsub.f32 %v1455_v52, %v1466_v63  ;;  %5554 = vmatprep.subr.bf16.mxu1 %v6613_v11  ;;  %v392_v9 = vrot.slane %v6590_v27, %v391_v4 }
  0xc6   : > { %5189 = vmatprep.mubr.f32.mxu0 %v6392_v22  ;;  %5556 = vmatpush3.bf16.msra.mxu1 %v6613_v11  ;;  %v1582_v51 = vsub.f32 %v1580_v13, %v1581_v40  ;;  %v5605_v58 = vpack.c.bf16 %v1588_v45, %v1581_v40  ;;  %v1590_v19 = vand.u32 4294901760, %v1589_v56 }
  0xc7   : > { %v1567_v17 = vand.u32 4294901760, %v1566_v10  ;;  %5558 = vmatprep.subr.bf16.mxu1 %v6617_v32  ;;  %5600 = vmatpush3.bf16.msra.mxu0 %v5597_v47 }
  0xc8   : > { %v1583_v18 = vand.u32 4294901760, %v1582_v51 }
  0xc9   : > { %v1568_v44 = vsub.f32 %v1566_v10, %v1567_v17  ;;  %v5601_v48 = vpack.c.bf16 %v1574_v33, %v1567_v17  ;;  %v2015_v17 = vld [vmem:[#allocation7 + $0x10] sm:$0xff] }
  0xca   : > { %5560 = vmatpush3.bf16.msra.mxu1 %v6617_v32  ;;  %v5569_v16 = vpack.c.bf16 %v1590_v19, %v1583_v18 }
  0xcb   : > { %v1569_v54 = vand.u32 4294901760, %v1568_v44  ;;  %5602 = vmatprep.subr.bf16.mxu0 %v5601_v48  ;;  %5562 = vmatprep.subr.bf16.mxu1 %v5561_v53 }
  0xcc   : > { %5604 = vmatpush3.bf16.msra.mxu0 %v5601_v48 }
  0xcd   : > { %v5565_v59 = vpack.c.bf16 %v1576_v55, %v1569_v54  ;;  %5606 = vmatprep.subr.bf16.mxu0 %v5605_v58  ;;  %5130 = vmatmul.mubr.f32.vlgmr.msra.gmra.mrb[2].mxu1 %v6452_v57  ;;  %v5577_v57 = vpack.c.bf16 %v1573_v12, %v1566_v10 }
  0xce   : > { %5564 = vmatpush3.bf16.msra.mxu1 %v5561_v53  ;;  %5144 = vmatprep.mubr.f32.mxu1 %v6392_v22 }
  0xcf   : > { %5566 = vmatprep.subr.bf16.mxu1 %v5565_v59 }
  0xd0   : > { %5608 = vmatpush3.bf16.msra.mxu0 %v5605_v58 }
  0xd1   : > { %5610 = vmatprep.subr.bf16.mxu0 %v6611_v7 }
  0xd2   : > { %5568 = vmatpush3.bf16.msra.mxu1 %v5565_v59 }
  0xd3   : > { %5190 = vmatmul.mubr.f32.vlgmr.msra.gmra.mrb[2].mxu0 %v6398_v26  ;;  %5570 = vmatprep.subr.bf16.mxu1 %v5569_v16 }
  0xd4   : > { %5612 = vmatpush3.bf16.msra.mxu0 %v6611_v7  ;;  %5204 = vmatprep.mubr.f32.mxu0 %v6392_v22 }
  0xd5   : > { %5614 = vmatprep.subr.bf16.mxu0 %v6613_v11 }
  0xd6   : > { %5572 = vmatpush3.bf16.msra.mxu1 %v5569_v16 }
  0xd7   : > { %5574 = vmatprep.subr.bf16.mxu1 %v5573_v20 }
  0xd8   : > { %5616 = vmatpush3.bf16.msra.mxu0 %v6613_v11 }
  0xd9   : > { %5618 = vmatprep.subr.bf16.mxu0 %v6617_v32  ;;  %5145 = vmatmul.mubr.f32.vlgmr.msra.gmra.mrb[2].mxu1 %v6398_v26 }
  0xda   : > { %5576 = vmatpush3.bf16.msra.mxu1 %v5573_v20  ;;  %5159 = vmatprep.mubr.f32.mxu1 %v6404_v28 }
  0xdb   : > { %5578 = vmatprep.subr.bf16.mxu1 %v5577_v57 }
  0xdc   : > { %5620 = vmatpush3.bf16.msra.mxu0 %v6617_v32 }
  0xdd   : > { %5657 = vmatprep.subr.bf16.mxu0 %v6114_v0 }
  0xde   : > { %5580 = vmatpush3.bf16.msra.mxu1 %v5577_v57 }
  0xdf   : > { %5205 = vmatmul.mubr.f32.vlgmr.msra.gmra.mrb[2].mxu0 %v6398_v26  ;;  %5582 = vmatprep.subr.bf16.mxu1 %v5581_v21 }
  0xe0   : > { %5277 = vmatprep.mubr.msk.f32.mxu0 %vm6115_vm0, %v6116_v1 }
  0xe2   : > { %5584 = vmatpush3.bf16.msra.mxu1 %v5581_v21 }
  0xe3   : > { %5586 = vmatprep.subr.bf16.mxu1 %v6611_v7 }
  0xe5   : > { %5160 = vmatmul.mubr.f32.vlgmr.msra.gmra.mrb[2].mxu1 %v6420_v34 }
  0xe6   : > { %5588 = vmatpush3.bf16.msra.mxu1 %v6611_v7  ;;  %5174 = vmatprep.mubr.f32.mxu1 %v6424_v36 }
  0xe7   : > { %5590 = vmatprep.subr.bf16.mxu1 %v6613_v11 }
  0xea   : > { %5592 = vmatpush3.bf16.msra.mxu1 %v6613_v11 }
  0xeb   : > { %5594 = vmatprep.subr.bf16.mxu1 %v6617_v32 }
  0xee   : > { %5596 = vmatpush3.bf16.msra.mxu1 %v6617_v32 }
  0xef   : > { %5621 = vmatprep.subr.bf16.mxu1 %v6114_v0 }
  0xf1   : > { %5175 = vmatmul.mubr.f32.vlgmr.msra.gmra.mrb[2].mxu1 %v6430_v42 }
  0xf2   : > { %5215 = vmatprep.mubr.msk.f32.mxu1 %vm6115_vm0, %v6116_v1 }
 0x192   : > { %v5116_v30 = vpop.f32.mrb[0].mxu1 }
 0x193   : > { %v1443_v31 = vpop.f32.mrb[1].mxu1  ;;  %v5730_v37 = vadd.f32 %v5116_v30, %v891_v29 }
 0x194   : > { %v5731_v35 = vadd.f32 %v1443_v31, %v891_v29 }
 0x196   : > { %2017 = vxpose.xlu0.b32.start [1/2] (short) (narrow) %v5731_v35, 32 }
 0x198   : > { %v878_v22 = vpop.f32.mrb[0].mxu0 }
 0x199   : > { %v5026_v26 = vpop.f32.mrb[1].mxu0  ;;  %v5729_v12 = vadd.f32 %v878_v22, %v392_v9 }
 0x19a   : > { %2018 = vxpose.xlu0.b32.end [2/2] (short) (narrow) %v5730_v37, 32 }
 0x19b   : > { %v2107_v32 = vsel %vm393_vm2, %v5729_v12, 0 }
 0x19c   : > { %v6671_v41 = vand.u32 4294901760, %v2107_v32 }
 0x19e   : > { %v2179_v47 = vsub.f32 %v2107_v32, %v6671_v41 }
 0x1a0   : > { %v2180_v56 = vand.u32 4294901760, %v2179_v47 }
 0x1a2   : > { %v2181_v22 = vsub.f32 %v2179_v47, %v2180_v56 }
 0x1b2   : > { %v5206_v19 = vpop.f32.mrb[2].mxu0 }
 0x1b3   : > { %v2003_v21 = vpop.f32.mrb[3].mxu0 }
 0x216   : > { %v2033_v28 = vpop.trf.xlu0 }
 0x217   : > { %2065 = vrot.lane.b32.xlu0 %v2033_v28, %s6117_s18  ;;  %2053 = vrot.lane.b32.xlu1 %v2033_v28, %s6118_s25 }
 0x21a   : > { %v2034_v34 = vpop.trf.xlu0 }
 0x21b   : > { %2077 = vrot.lane.b32.xlu1 %v2033_v28, %s6119_s14 }
 0x21e   : > { %v2035_v36 = vpop.trf.xlu0 }
 0x21f   : > { %2055 = vrot.lane.b32.xlu1 %v2034_v34, %s6118_s25 }
 0x222   : > { %v2036_v42 = vpop.trf.xlu0 }
 0x223   : > { %2067 = vrot.lane.b32.xlu1 %v2034_v34, %s6117_s18 }
 0x227   : > { %2079 = vrot.lane.b32.xlu1 %v2034_v34, %s6119_s14 }
 0x22b   : > { %2057 = vrot.lane.b32.xlu1 %v2035_v36, %s6118_s25 }
 0x22f   : > { %2069 = vrot.lane.b32.xlu1 %v2035_v36, %s6117_s18 }
 0x233   : > { %2081 = vrot.lane.b32.xlu1 %v2035_v36, %s6119_s14 }
 0x237   : > { %2059 = vrot.lane.b32.xlu1 %v2036_v42, %s6118_s25  ;;  %s4552_s25 = scalar_lea.sflag [#allocation10], %s6340_s21 }
 0x23b   : > { %2071 = vrot.lane.b32.xlu1 %v2036_v42, %s6117_s18 }
 0x23f   : > { %2083 = vrot.lane.b32.xlu1 %v2036_v42, %s6119_s14 }
 0x289   : > { %v2054_v25 = vpop.permute.xlu1 %2053  ;;  %v2066_v35 = vpop.permute.xlu0 %2065 }
 0x28a   : > { %v2090_v31 = vsel %vm2089_vm3, %v2033_v28, %v2054_v25 }
 0x28b   : > { %v2094_v37 = vsel %vm393_vm2, %v2090_v31, %v2066_v35 }
 0x28d   : > { %v2078_v29 = vpop.permute.xlu1 %2077 }
 0x28e   : > { %v2098_v52 = vsel %vm892_vm1, %v2094_v37, %v2078_v29  ;;  %v2182_v29 = vand.u32 4294901760, %v2181_v22 }
 0x28f   : > { %v2102_v62 = vmul.f32 %v2098_v52, %v2013_v39 }
 0x291   : > { %v2056_v30 = vpop.permute.xlu1 %2055  ;;  %v2110_v6 = vand.u32 4294901760, %v2102_v62 }
 0x292   : > { %v2091_v60 = vsel %vm2089_vm3, %v2034_v34, %v2056_v30 }
 0x293   : > { %v6675_v44 = vsub.f32 %v2102_v62, %v2110_v6 }
 0x295   : > { %v2068_v38 = vpop.permute.xlu1 %2067  ;;  %v2191_v51 = vand.u32 4294901760, %v6675_v44 }
 0x296   : > { %v2095_v63 = vsel %vm393_vm2, %v2091_v60, %v2068_v38  ;;  %v5176_v60 = vpop.f32.mrb[2].mxu1 }
 0x297   : > { %v2192_v16 = vsub.f32 %v6675_v44, %v2191_v51  ;;  %v1823_v62 = vpop.f32.mrb[3].mxu1 }
 0x299   : > { %v2080_v2 = vpop.permute.xlu1 %2079  ;;  %v2193_v25 = vand.u32 4294901760, %v2192_v16 }
 0x29a   : > { %v2099_v3 = vsel %vm892_vm1, %v2095_v63, %v2080_v2  ;;  %v6698_v63 = vadd.f32 %v2003_v21, %v1823_v62 }
 0x29b   : > { %v2103_v5 = vmul.f32 %v2099_v3, %v2014_v61  ;;  %v6696_v61 = vadd.f32 %v5206_v19, %v5176_v60 }
 0x29c   : > { %v2615_v2 = vand.u32 4294901760, %v6698_v63 }
 0x29d   : > { %v2113_v7 = vand.u32 4294901760, %v2103_v5  ;;  %v2058_v8 = vpop.permute.xlu1 %2057  ;;  %v2618_v3 = vand.u32 4294901760, %v6696_v61 }
 0x29e   : > { %v2092_v13 = vsel %vm2089_vm3, %v2035_v36, %v2058_v8 }
 0x29f   : > { %v6663_v10 = vpack.c.bf16 %v2113_v7, %v2110_v6  ;;  %v6673_v43 = vsub.f32 %v2103_v5, %v2113_v7  ;;  %v6706_v4 = vpack.c.bf16 %v2618_v3, %v2615_v2  ;;  %v6723_v7 = vsub.f32 %v6698_v63, %v2615_v2 }
 0x2a0   : > { %v6726_v8 = vsub.f32 %v6696_v61, %v2618_v3 }
 0x2a1   : > { %v2070_v11 = vpop.permute.xlu1 %2069  ;;  %5623 = vmatpush3.bf16.msra.mxu1 %v6663_v10  ;;  %v2198_v48 = vand.u32 4294901760, %v6673_v43  ;;  %v5634_v39 = vpack.c.bf16 %v6673_v43, %v6675_v44  ;;  %5659 = vmatpush3.bf16.msra.mxu0 %v6706_v4  ;;  %v2694_v9 = vand.u32 4294901760, %v6723_v7 }
 0x2a2   : > { %5624 = vmatprep.subr.bf16.mxu1 %v6114_v0  ;;  %v2096_v14 = vsel %vm393_vm2, %v2092_v13, %v2070_v11  ;;  %5660 = vmatprep.subr.bf16.mxu0 %v6114_v0  ;;  %v2701_v11 = vand.u32 4294901760, %v6726_v8  ;;  %v5664_v13 = vpack.c.bf16 %v6726_v8, %v6723_v7 }
 0x2a3   : > { %v2199_v59 = vsub.f32 %v6673_v43, %v2198_v48  ;;  %v5646_v5 = vpack.c.bf16 %v2198_v48, %v2191_v51 }
 0x2a4   : > { %v2702_v12 = vsub.f32 %v6726_v8, %v2701_v11 }
 0x2a5   : > { %v2082_v15 = vpop.permute.xlu1 %2081  ;;  %v2200_v34 = vand.u32 4294901760, %v2199_v59 }
 0x2a6   : > { %v2100_v23 = vsel %vm892_vm1, %v2096_v14, %v2082_v15  ;;  %v2703_v15 = vand.u32 4294901760, %v2702_v12 }
 0x2a7   : > { %v2104_v33 = vmul.f32 %v2100_v23, %v2015_v17  ;;  %v5628_v31 = vpack.c.bf16 %v2200_v34, %v2193_v25  ;;  %v6734_v17 = vpack.c.bf16 %v2701_v11, %v2694_v9 }
 0x2a9   : > { %v2060_v40 = vpop.permute.xlu1 %2059  ;;  %v2116_v45 = vand.u32 4294901760, %v2104_v33 }
 0x2aa   : > { %v2093_v49 = vsel %vm2089_vm3, %v2036_v42, %v2060_v40 }
 0x2ab   : > { %v2204_v53 = vsub.f32 %v2104_v33, %v2116_v45 }
 0x2ad   : > { %v2072_v46 = vpop.permute.xlu1 %2071  ;;  %v2205_v20 = vand.u32 4294901760, %v2204_v53 }
 0x2ae   : > { %v2097_v54 = vsel %vm393_vm2, %v2093_v49, %v2072_v46 }
 0x2af   : > { %v2206_v36 = vsub.f32 %v2204_v53, %v2205_v20 }
 0x2b1   : > { %v2084_v55 = vpop.permute.xlu1 %2083  ;;  %v2207_v35 = vand.u32 4294901760, %v2206_v36 }
 0x2b2   : > { %v2101_v58 = vsel %vm892_vm1, %v2097_v54, %v2084_v55 }
 0x2b3   : > { %v2105_v18 = vmul.f32 %v2101_v58, %v2016_v50 }
 0x2b5   : > { %v2119_v57 = vand.u32 4294901760, %v2105_v18 }
 0x2b7   : > { %v5625_v26 = vpack.c.bf16 %v2119_v57, %v2116_v45  ;;  %v2211_v28 = vsub.f32 %v2105_v18, %v2119_v57 }
 0x2b9   : > { %v2212_v42 = vand.u32 4294901760, %v2211_v28  ;;  %5626 = vmatpush3.bf16.msra.mxu1 %v5625_v26  ;;  %v5637_v52 = vpack.c.bf16 %v2211_v28, %v2204_v53 }
 0x2ba   : > { %5627 = vmatprep.subr.bf16.mxu1 %v6114_v0 }
 0x2bb   : > { %v2213_v30 = vsub.f32 %v2211_v28, %v2212_v42  ;;  %v5649_v6 = vpack.c.bf16 %v2212_v42, %v2205_v20 }
 0x2bc   : > { %5216 = vmatmul.mubr.f32.vlgmr.msra.gmra.mrb[4].mxu1 %v2182_v29 }
 0x2bd   : > { %5629 = vmatpush3.bf16.msra.mxu1 %v5628_v31  ;;  %v2214_v37 = vand.u32 4294901760, %v2213_v30  ;;  %5226 = vmatprep.mubr.msk.f32.mxu1 %vm6115_vm0, %v6116_v1 }
 0x2be   : > { %5630 = vmatprep.subr.bf16.mxu1 %v6114_v0 }
 0x2bf   : > { %v5631_v38 = vpack.c.bf16 %v2214_v37, %v2207_v35 }
 0x2c1   : > { %5632 = vmatpush3.bf16.msra.mxu1 %v5631_v38 }
 0x2c2   : > { %5633 = vmatprep.subr.bf16.mxu1 %v6114_v0 }
 0x2c4   : > { %5227 = vmatmul.mubr.f32.vlgmr.msra.gmra.mrb[4].mxu1 %v6671_v41 }
 0x2c5   : > { %5635 = vmatpush3.bf16.msra.mxu1 %v5634_v39  ;;  %5237 = vmatprep.mubr.msk.f32.mxu1 %vm6115_vm0, %v6116_v1 }
 0x2c6   : > { %5636 = vmatprep.subr.bf16.mxu1 %v6114_v0 }
 0x2c9   : > { %5638 = vmatpush3.bf16.msra.mxu1 %v5637_v52 }
 0x2ca   : > { %5639 = vmatprep.subr.bf16.mxu1 %v6114_v0 }
 0x2cc   : > { %5238 = vmatmul.mubr.f32.vlgmr.msra.gmra.mrb[4].mxu1 %v2179_v47 }
 0x2cd   : > { %5641 = vmatpush3.bf16.msra.mxu1 %v6663_v10  ;;  %5248 = vmatprep.mubr.msk.f32.mxu1 %vm6115_vm0, %v6116_v1 }
 0x2ce   : > { %5642 = vmatprep.subr.bf16.mxu1 %v6114_v0 }
 0x2d1   : > { %5644 = vmatpush3.bf16.msra.mxu1 %v5625_v26 }
 0x2d2   : > { %5645 = vmatprep.subr.bf16.mxu1 %v6114_v0 }
 0x2d4   : > { %5249 = vmatmul.mubr.f32.vlgmr.msra.gmra.mrb[4].mxu1 %v2180_v56 }
 0x2d5   : > { %5647 = vmatpush3.bf16.msra.mxu1 %v5646_v5  ;;  %5259 = vmatprep.mubr.msk.f32.mxu1 %vm6115_vm0, %v6116_v1 }
 0x2d6   : > { %5648 = vmatprep.subr.bf16.mxu1 %v6114_v0 }
 0x2d9   : > { %5650 = vmatpush3.bf16.msra.mxu1 %v5649_v6 }
 0x2da   : > { %5651 = vmatprep.subr.bf16.mxu1 %v6114_v0 }
 0x2dc   : > { %5260 = vmatmul.mubr.f32.vlgmr.msra.gmra.mrb[4].mxu1 %v6671_v41 }
 0x2dd   : > { %5653 = vmatpush3.bf16.msra.mxu1 %v6663_v10  ;;  %5270 = vmatprep.mubr.msk.f32.mxu1 %vm6115_vm0, %v6116_v1  ;;  %v2695_v10 = vsub.f32 %v6723_v7, %v2694_v9 }
 0x2de   : > { %5654 = vmatprep.subr.bf16.mxu1 %v6114_v0 }
 0x2df   : > { %v2696_v14 = vand.u32 4294901760, %v2695_v10 }
 0x2e1   : > { %5656 = vmatpush3.bf16.msra.mxu1 %v5625_v26  ;;  %v5661_v23 = vpack.c.bf16 %v2703_v15, %v2696_v14 }
 0x2e4   : > { %5271 = vmatmul.mubr.f32.vlgmr.msra.gmra.mrb[4].mxu1 %v6671_v41 }
 0x3b7   : > { %v2590_v32 = vpop.f32.mrb[4].mxu1 }
 0x3b8   : > { %v5272_v33 = vpop.f32.mrb[5].mxu1  ;;  %v3566_v40 = vsel %vm3565_vm4, %v2590_v32, -inf  ;;  %v3075_v41 = vsel %vm3074_vm5, %v2590_v32, -inf  ;;  %v4055_v43 = vsel %vm4054_vm6, %v2590_v32, -inf  ;;  %v2599_v44 = vsel %vm2089_vm3, %v2590_v32, -inf }
 0x3b9   : > { %3567 = vmax.xlane.f32.xlu0 %v3566_v40  ;;  %3076 = vmax.xlane.f32.xlu1 %v3075_v41 }
 0x3bd   : > { %4056 = vmax.xlane.f32.xlu0 %v4055_v43  ;;  %2600 = vmax.xlane.f32.xlu1 %v2599_v44 }
 0x446   : > { %v3568_v45 = vpop.xlane.xlu0 %3567  ;;  %v3077_v46 = vpop.xlane.xlu1 %3076 }
 0x447   : > { %v3569_v47 = vsub.f32 %v2590_v32, %v3568_v45  ;;  %v3078_v48 = vsub.f32 %v2590_v32, %v3077_v46 }
 0x449   : > { %v3570_v49 = vmul.f32 1.442695, %v3569_v47  ;;  %v3079_v50 = vmul.f32 1.442695, %v3078_v48 }
 0x44a   : > { %v2601_v54 = vpop.xlane.xlu1 %2600  ;;  %v4057_v18 = vpop.xlane.xlu0 %4056 }
 0x44b   : > { %5903 = vpow2.f32 %v3570_v49  ;;  %v2602_v55 = vsub.f32 %v2590_v32, %v2601_v54  ;;  %v4058_v16 = vsub.f32 %v2590_v32, %v4057_v18 }
 0x44c   : > { %5905 = vpow2.f32 %v3079_v50 }
 0x44d   : > { %v2603_v56 = vmul.f32 1.442695, %v2602_v55  ;;  %v4059_v22 = vmul.f32 1.442695, %v4058_v16 }
 0x44f   : > { %5907 = vpow2.f32 %v2603_v56 }
 0x450   : > { %5909 = vpow2.f32 %v4059_v22 }
 0x455   : > { %v6737_v51 = vpop.eup %5903 }
 0x456   : > { %v6739_v53 = vpop.eup %5905  ;;  %3573 = vrot.lane.b32.xlu0 %v6737_v51, %s6120_s15 }
 0x457   : > { %3082 = vrot.lane.b32.xlu1 %v6739_v53, %s6121_s13 }
 0x459   : > { %v5908_v58 = vpop.eup %5907 }
 0x45a   : > { %v2605_v59 = vsel %vm2089_vm3, %v5908_v58, 0.0  ;;  %v6748_v26 = vpop.eup %5909 }
 0x475   : > { %2606 = vadd.xlane.f32.xlu0 %v2605_v59 }
 0x4c8   : > { %v3574_v19 = vpop.permute.xlu0 %3573 }
 0x4c9   : > { %v3083_v20 = vpop.permute.xlu1 %3082  ;;  %v3576_v57 = vsel %vm2089_vm3, %v3574_v19, 0.0 }
 0x4ca   : > { %3577 = vadd.xlane.f32.xlu0 %v3576_v57  ;;  %v3085_v21 = vsel %vm2089_vm3, %v3083_v20, 0.0 }
 0x4cb   : > { %3086 = vadd.xlane.f32.xlu1 %v3085_v21 }
 0x4dc   : > { %4062 = vrot.lane.b32.xlu1 %v6748_v26, %s6122_s11 }
 0x4e0   : > { %3097 = vrot.lane.b32.xlu1 %v6698_v63, %s6120_s15 }
 0x4e4   : > { %3099 = vrot.lane.b32.xlu1 %v6696_v61, %s6120_s15 }
 0x502   : > { %v2607_v28 = vpop.xlane.xlu0 %2606 }
 0x503   : > { %5911 = vrcp.f32 %v2607_v28 }
 0x50d   : > { %v5912_v34 = vpop.eup %5911 }
 0x50e   : > { %v6756_v36 = vmul.f32 %v5912_v34, %v5908_v58 }
 0x510   : > { %v2612_v42 = vsel %vm2089_vm3, %v6756_v36, 0 }
 0x511   : > { %v2681_v25 = vand.u32 4294901760, %v2612_v42 }
 0x513   : > { %v2682_v29 = vsub.f32 %v2612_v42, %v2681_v25 }
 0x515   : > { %v2683_v30 = vand.u32 4294901760, %v2682_v29 }
 0x517   : > { %v2684_v31 = vsub.f32 %v2682_v29, %v2683_v30 }
 0x519   : > { %v2685_v35 = vand.u32 4294901760, %v2684_v31 }
 0x51b   : > { %5278 = vmatmul.mubr.f32.vlgmr.msra.gmra.mrb[4].mxu0 %v2685_v35 }
 0x51c   : > { %5662 = vmatpush3.bf16.msra.mxu0 %v5661_v23  ;;  %5284 = vmatprep.mubr.msk.f32.mxu0 %vm6115_vm0, %v6116_v1 }
 0x51d   : > { %5663 = vmatprep.subr.bf16.mxu0 %v6114_v0 }
 0x523   : > { %5285 = vmatmul.mubr.f32.vlgmr.msra.gmra.mrb[4].mxu0 %v2681_v25 }
 0x524   : > { %5665 = vmatpush3.bf16.msra.mxu0 %v5664_v13  ;;  %5291 = vmatprep.mubr.msk.f32.mxu0 %vm6115_vm0, %v6116_v1 }
 0x525   : > { %5666 = vmatprep.subr.bf16.mxu0 %v6114_v0 }
 0x52b   : > { %5292 = vmatmul.mubr.f32.vlgmr.msra.gmra.mrb[4].mxu0 %v2682_v29 }
 0x52c   : > { %5668 = vmatpush3.bf16.msra.mxu0 %v6706_v4  ;;  %5298 = vmatprep.mubr.msk.f32.mxu0 %vm6115_vm0, %v6116_v1 }
 0x52d   : > { %5669 = vmatprep.subr.bf16.mxu0 %v6114_v0 }
 0x533   : > { %5299 = vmatmul.mubr.f32.vlgmr.msra.gmra.mrb[4].mxu0 %v2683_v30 }
 0x534   : > { %5671 = vmatpush3.bf16.msra.mxu0 %v6734_v17  ;;  %5305 = vmatprep.mubr.msk.f32.mxu0 %vm6115_vm0, %v6116_v1 }
 0x535   : > { %5672 = vmatprep.subr.bf16.mxu0 %v6114_v0 }
 0x53b   : > { %5306 = vmatmul.mubr.f32.vlgmr.msra.gmra.mrb[4].mxu0 %v2681_v25 }
 0x53c   : > { %5674 = vmatpush3.bf16.msra.mxu0 %v6706_v4  ;;  %5312 = vmatprep.mubr.msk.f32.mxu0 %vm6115_vm0, %v6116_v1 }
 0x53d   : > { %5675 = vmatprep.subr.bf16.mxu0 %v6114_v0 }
 0x543   : > { %5313 = vmatmul.mubr.f32.vlgmr.msra.gmra.mrb[4].mxu0 %v2681_v25 }
 0x544   : > { %5319 = vmatprep.mubr.msk.f32.mxu0 %vm6115_vm0, %v6116_v1 }
 0x557   : > { %v3578_v38 = vpop.xlane.xlu0 %3577 }
 0x558   : > { %v3087_v37 = vpop.xlane.xlu1 %3086 }
 0x559   : > { %5913 = vrcp.f32 %v3087_v37 }
 0x55a   : > { %5915 = vrcp.f32 %v3578_v38 }
 0x55c   : > { %v4063_v39 = vpop.permute.xlu1 %4062 }
 0x55d   : > { %v4065_v52 = vsel %vm2089_vm3, %v4063_v39, 0.0 }
 0x55e   : > { %4066 = vadd.xlane.f32.xlu1 %v4065_v52 }
 0x560   : > { %v3098_v60 = vpop.permute.xlu1 %3097 }
 0x561   : > { %v3106_v62 = vand.u32 4294901760, %v3098_v60 }
 0x563   : > { %v5914_v2 = vpop.eup %5913  ;;  %v3184_v3 = vsub.f32 %v3098_v60, %v3106_v62 }
 0x564   : > { %v3100_v4 = vpop.permute.xlu1 %3099  ;;  %v3089_v5 = vmul.f32 %v5914_v2, %v6739_v53  ;;  %v5916_v11 = vpop.eup %5915 }
 0x565   : > { %v3185_v6 = vand.u32 4294901760, %v3184_v3  ;;  %v3109_v7 = vand.u32 4294901760, %v3100_v4  ;;  %v3580_v17 = vmul.f32 %v5916_v11, %v6737_v51 }
 0x566   : > { %3091 = vrot.lane.b32.xlu0 %v3089_v5, %s6121_s13 }
 0x567   : > { %v5676_v8 = vpack.c.bf16 %v3109_v7, %v3106_v62  ;;  %v3191_v9 = vsub.f32 %v3100_v4, %v3109_v7  ;;  %v3186_v10 = vsub.f32 %v3184_v3, %v3185_v6 }
 0x569   : > { %v3192_v12 = vand.u32 4294901760, %v3191_v9  ;;  %v5682_v13 = vpack.c.bf16 %v3191_v9, %v3184_v3  ;;  %5677 = vmatpush3.bf16.msra.mxu0 %v5676_v8  ;;  %v3187_v23 = vand.u32 4294901760, %v3186_v10 }
 0x56a   : > { %3586 = vrot.lane.b32.xlu0 %v6698_v63, %s6123_s26  ;;  %5678 = vmatprep.subr.bf16.mxu0 %v6114_v0 }
 0x56b   : > { %v3193_v14 = vsub.f32 %v3191_v9, %v3192_v12  ;;  %v5688_v15 = vpack.c.bf16 %v3192_v12, %v3185_v6 }
 0x56d   : > { %v3194_v32 = vand.u32 4294901760, %v3193_v14 }
 0x56e   : > { %3582 = vrot.lane.b32.xlu0 %v3580_v17, %s6120_s15  ;;  %s6124_s15 = smov [#allocation9]  }
 0x56f   : > { %v5679_v33 = vpack.c.bf16 %v3194_v32, %v3187_v23  ;;  %s6009_s13 = sshll.u32 %s6124_s15, 4  ;;  %s6010_s13 = int_to_ptr.vmem [resolvable:$false] %s6009_s13 }
 0x572   : > { %3588 = vrot.lane.b32.xlu0 %v6696_v61, %s6123_s26 }
 0x576   : > { %4075 = vrot.lane.b32.xlu0 %v6698_v63, %s6117_s18 }
 0x5d8   : > { %v3092_v40 = vpop.permute.xlu0 %3091 }
 0x5d9   : > { %v3103_v41 = vsel %vm2089_vm3, %v3092_v40, 0  ;;  %v3094_v47 = vadd.f32 %v3092_v40, %v6756_v36 }
 0x5da   : > { %v3172_v43 = vand.u32 4294901760, %v3103_v41 }
 0x5dc   : > { %v3173_v44 = vsub.f32 %v3103_v41, %v3172_v43  ;;  %v3587_v45 = vpop.permute.xlu0 %3586 }
 0x5dd   : > { %v3595_v59 = vand.u32 4294901760, %v3587_v45 }
 0x5de   : > { %v3174_v46 = vand.u32 4294901760, %v3173_v44 }
 0x5df   : > { %v3673_v16 = vsub.f32 %v3587_v45, %v3595_v59 }
 0x5e0   : > { %v3175_v48 = vsub.f32 %v3173_v44, %v3174_v46  ;;  %v3583_v49 = vpop.permute.xlu0 %3582 }
 0x5e1   : > { %v6795_v50 = vadd.f32 %v3583_v49, %v3094_v47  ;;  %v3592_v56 = vsel %vm2089_vm3, %v3583_v49, 0  ;;  %v3674_v57 = vand.u32 4294901760, %v3673_v16 }
 0x5e2   : > { %v3176_v51 = vand.u32 4294901760, %v3175_v48  ;;  %v3661_v18 = vand.u32 4294901760, %v3592_v56 }
 0x5e3   : > { %v3675_v28 = vsub.f32 %v3673_v16, %v3674_v57 }
 0x5e4   : > { %5320 = vmatmul.mubr.f32.vlgmr.msra.gmra.mrb[4].mxu0 %v3176_v51  ;;  %v3589_v55 = vpop.permute.xlu0 %3588  ;;  %v3662_v20 = vsub.f32 %v3592_v56, %v3661_v18 }
 0x5e5   : > { %5680 = vmatpush3.bf16.msra.mxu0 %v5679_v33  ;;  %5326 = vmatprep.mubr.msk.f32.mxu0 %vm6115_vm0, %v6116_v1  ;;  %v3598_v58 = vand.u32 4294901760, %v3589_v55  ;;  %v3676_v42 = vand.u32 4294901760, %v3675_v28 }
 0x5e6   : > { %5681 = vmatprep.subr.bf16.mxu0 %v6114_v0  ;;  %v3663_v21 = vand.u32 4294901760, %v3662_v20 }
 0x5e7   : > { %v3680_v19 = vsub.f32 %v3589_v55, %v3598_v58  ;;  %v5694_v22 = vpack.c.bf16 %v3598_v58, %v3595_v59 }
 0x5e8   : > { %v3664_v34 = vsub.f32 %v3662_v20, %v3663_v21  ;;  %v4076_v35 = vpop.permute.xlu0 %4075 }
 0x5e9   : > { %v5700_v30 = vpack.c.bf16 %v3680_v19, %v3673_v16  ;;  %v4084_v37 = vand.u32 4294901760, %v4076_v35 }
 0x5ea   : > { %v3665_v25 = vand.u32 4294901760, %v3664_v34 }
 0x5eb   : > { %v4067_v63 = vpop.xlane.xlu1 %4066  ;;  %v4162_v39 = vsub.f32 %v4076_v35, %v4084_v37 }
 0x5ec   : > { %5917 = vrcp.f32 %v4067_v63  ;;  %5327 = vmatmul.mubr.f32.vlgmr.msra.gmra.mrb[4].mxu0 %v3172_v43 }
 0x5ed   : > { %5683 = vmatpush3.bf16.msra.mxu0 %v5682_v13  ;;  %5333 = vmatprep.mubr.msk.f32.mxu0 %vm6115_vm0, %v6116_v1  ;;  %v4163_v5 = vand.u32 4294901760, %v4162_v39 }
 0x5ee   : > { %5684 = vmatprep.subr.bf16.mxu0 %v6114_v0 }
 0x5ef   : > { %v4164_v10 = vsub.f32 %v4162_v39, %v4163_v5 }
 0x5f4   : > { %5334 = vmatmul.mubr.f32.vlgmr.msra.gmra.mrb[4].mxu0 %v3173_v44 }
 0x5f5   : > { %5686 = vmatpush3.bf16.msra.mxu0 %v5676_v8  ;;  %5340 = vmatprep.mubr.msk.f32.mxu0 %vm6115_vm0, %v6116_v1 }
 0x5f6   : > { %v5918_v53 = vpop.eup %5917  ;;  %5687 = vmatprep.subr.bf16.mxu0 %v6114_v0 }
 0x5f7   : > { %v4069_v54 = vmul.f32 %v5918_v53, %v6748_v26 }
 0x5f9   : > { %4071 = vrot.lane.b32.xlu0 %v4069_v54, %s6122_s11  ;;  %s6011_s11 = scalar_lea.vmem %s6010_s13, 256 }
 0x5fc   : > { %5341 = vmatmul.mubr.f32.vlgmr.msra.gmra.mrb[4].mxu0 %v3174_v46 }
 0x5fd   : > { %5689 = vmatpush3.bf16.msra.mxu0 %v5688_v15  ;;  %4077 = vrot.lane.b32.xlu0 %v6696_v61, %s6117_s18  ;;  %v3681_v61 = vand.u32 4294901760, %v3680_v19  ;;  %v4165_v15 = vand.u32 4294901760, %v4164_v10  ;;  %s4578_s18 = sshll.u32 %s375_s17, 4  ;;  %s4579_s18 = int_to_ptr.vmem [resolvable:$true] %s4578_s18 }
 0x5fe   : > { %5347 = vmatprep.mubr.msk.f32.mxu0 %vm6115_vm0, %v6116_v1  ;;  %5690 = vmatprep.subr.bf16.mxu0 %v6114_v0  ;;  %s6005_s14 = scalar_lea.vmem %s4579_s18, 128  ;;  %p6012_p9 = scmp.lt.s32.totalorder %s4579_s18, %s6010_s13 }
 0x5ff   : > { %v3682_v26 = vsub.f32 %v3680_v19, %v3681_v61  ;;  %v5706_v31 = vpack.c.bf16 %v3681_v61, %v3674_v57  ;;  %p6006_p0 = scmp.ne.s32.totalorder %s4579_s18, %s6005_s14  ;;  %p6013_p12 = scmp.lt.s32.totalorder %s6011_s11, %s6005_s14 }
 0x601   : > { %v3683_v36 = vand.u32 4294901760, %v3682_v26  ;;  %p6007_p3 = pnand %p6006_p0, %p6964_p1  ;;  %p6014_p2 = por %p6013_p12, %p6012_p9 }
 0x603   : > { %v5697_v29 = vpack.c.bf16 %v3683_v36, %v3676_v42  ;;  %p6008_p7 = pneg %p6007_p3 }
 0x604   : > { %5348 = vmatmul.mubr.f32.vlgmr.msra.gmra.mrb[4].mxu0 %v3172_v43 }
 0x605   : > { %5692 = vmatpush3.bf16.msra.mxu0 %v5676_v8  ;;  %5354 = vmatprep.mubr.msk.f32.mxu0 %vm6115_vm0, %v6116_v1  ;;  %p6015_p13 = pnand %p6014_p2, %p6008_p7 }
 0x606   : > { %5693 = vmatprep.subr.bf16.mxu0 %v6114_v0 }
 0x60c   : > { %5355 = vmatmul.mubr.f32.vlgmr.msra.gmra.mrb[4].mxu0 %v3172_v43 }
 0x60d   : > { %5695 = vmatpush3.bf16.msra.mxu0 %v5694_v22  ;;  %5361 = vmatprep.mubr.msk.f32.mxu0 %vm6115_vm0, %v6116_v1 }
 0x60e   : > { %5696 = vmatprep.subr.bf16.mxu0 %v6114_v0 }
 0x614   : > { %5362 = vmatmul.mubr.f32.vlgmr.msra.gmra.mrb[4].mxu0 %v3665_v25 }
 0x615   : > { %5698 = vmatpush3.bf16.msra.mxu0 %v5697_v29  ;;  %5368 = vmatprep.mubr.msk.f32.mxu0 %vm6115_vm0, %v6116_v1 }
 0x616   : > { %5699 = vmatprep.subr.bf16.mxu0 %v6114_v0 }
 0x61c   : > { %5369 = vmatmul.mubr.f32.vlgmr.msra.gmra.mrb[4].mxu0 %v3661_v18 }
 0x61d   : > { %5701 = vmatpush3.bf16.msra.mxu0 %v5700_v30  ;;  %5375 = vmatprep.mubr.msk.f32.mxu0 %vm6115_vm0, %v6116_v1 }
 0x61e   : > { %5702 = vmatprep.subr.bf16.mxu0 %v6114_v0 }
 0x624   : > { %5376 = vmatmul.mubr.f32.vlgmr.msra.gmra.mrb[4].mxu0 %v3662_v20 }
 0x625   : > { %5704 = vmatpush3.bf16.msra.mxu0 %v5694_v22  ;;  %5382 = vmatprep.mubr.msk.f32.mxu0 %vm6115_vm0, %v6116_v1 }
 0x626   : > { %5705 = vmatprep.subr.bf16.mxu0 %v6114_v0 }
 0x62c   : > { %5383 = vmatmul.mubr.f32.vlgmr.msra.gmra.mrb[4].mxu0 %v3663_v21 }
 0x62d   : > { %5707 = vmatpush3.bf16.msra.mxu0 %v5706_v31  ;;  %5389 = vmatprep.mubr.msk.f32.mxu0 %vm6115_vm0, %v6116_v1 }
 0x62e   : > { %5708 = vmatprep.subr.bf16.mxu0 %v6114_v0 }
 0x634   : > { %5390 = vmatmul.mubr.f32.vlgmr.msra.gmra.mrb[4].mxu0 %v3661_v18 }
 0x635   : > { %5710 = vmatpush3.bf16.msra.mxu0 %v5694_v22  ;;  %5396 = vmatprep.mubr.msk.f32.mxu0 %vm6115_vm0, %v6116_v1 }
 0x636   : > { %5711 = vmatprep.subr.bf16.mxu0 %v6114_v0 }
 0x63c   : > { %5397 = vmatmul.mubr.f32.vlgmr.msra.gmra.mrb[4].mxu0 %v3661_v18 }
 0x63d   : > { %5403 = vmatprep.mubr.msk.f32.mxu0 %vm6115_vm0, %v6116_v1 }
 0x66b   : > { %v4072_v38 = vpop.permute.xlu0 %4071 }
 0x66c   : > { %v4074_v52 = vadd.f32 %v4072_v38, %v6795_v50  ;;  %v4081_v60 = vsel %vm2089_vm3, %v4072_v38, 0 }
 0x66d   : > { %v4150_v62 = vand.u32 4294901760, %v4081_v60 }
 0x66e   : > { %v4543_v2 = vmul.f32 0.25, %v4074_v52 }
 0x66f   : > { %v4151_v3 = vsub.f32 %v4081_v60, %v4150_v62  ;;  %v4078_v4 = vpop.permute.xlu0 %4077 }
 0x670   : > { %v4087_v6 = vand.u32 4294901760, %v4078_v4  ;;  %4545 = vst.msk [vmem:[%s375_s17] sm:$0xff] %vm2089_vm3, %v4543_v2 }
 0x671   : > { %v4152_v7 = vand.u32 4294901760, %v4151_v3 }
 0x672   : > { %v5712_v8 = vpack.c.bf16 %v4087_v6, %v4084_v37  ;;  %v4169_v9 = vsub.f32 %v4078_v4, %v4087_v6 }
 0x673   : > { %v4153_v11 = vsub.f32 %v4151_v3, %v4152_v7 }
 0x674   : > { %v4170_v12 = vand.u32 4294901760, %v4169_v9  ;;  %5713 = vmatpush3.bf16.msra.mxu0 %v5712_v8  ;;  %v5718_v32 = vpack.c.bf16 %v4169_v9, %v4162_v39 }
 0x675   : > { %v4154_v13 = vand.u32 4294901760, %v4153_v11  ;;  %5714 = vmatprep.subr.bf16.mxu0 %v6114_v0 }
 0x676   : > { %v4171_v14 = vsub.f32 %v4169_v9, %v4170_v12  ;;  %v5724_v33 = vpack.c.bf16 %v4170_v12, %v4163_v5 }
 0x677   : > { %5404 = vmatmul.mubr.f32.vlgmr.msra.gmra.mrb[4].mxu0 %v4154_v13 }
 0x678   : > { %v4172_v17 = vand.u32 4294901760, %v4171_v14  ;;  %5410 = vmatprep.mubr.msk.f32.mxu0 %vm6115_vm0, %v6116_v1 }
 0x67a   : > { %v5715_v23 = vpack.c.bf16 %v4172_v17, %v4165_v15 }
 0x67c   : > { %5716 = vmatpush3.bf16.msra.mxu0 %v5715_v23 }
 0x67d   : > { %5717 = vmatprep.subr.bf16.mxu0 %v6114_v0 }
 0x67f   : > { %5411 = vmatmul.mubr.f32.vlgmr.msra.gmra.mrb[4].mxu0 %v4150_v62 }
 0x680   : > { %5719 = vmatpush3.bf16.msra.mxu0 %v5718_v32  ;;  %5417 = vmatprep.mubr.msk.f32.mxu0 %vm6115_vm0, %v6116_v1 }
 0x681   : > { %5720 = vmatprep.subr.bf16.mxu0 %v6114_v0 }
 0x687   : > { %5418 = vmatmul.mubr.f32.vlgmr.msra.gmra.mrb[4].mxu0 %v4151_v3 }
 0x688   : > { %5722 = vmatpush3.bf16.msra.mxu0 %v5712_v8  ;;  %5424 = vmatprep.mubr.msk.f32.mxu0 %vm6115_vm0, %v6116_v1 }
 0x689   : > { %5723 = vmatprep.subr.bf16.mxu0 %v6114_v0 }
 0x68f   : > { %5425 = vmatmul.mubr.f32.vlgmr.msra.gmra.mrb[4].mxu0 %v4152_v7 }
 0x690   : > { %5725 = vmatpush3.bf16.msra.mxu0 %v5724_v33  ;;  %5431 = vmatprep.mubr.msk.f32.mxu0 %vm6115_vm0, %v6116_v1 }
 0x691   : > { %5726 = vmatprep.subr.bf16.mxu0 %v6114_v0 }
 0x697   : > { %5432 = vmatmul.mubr.f32.vlgmr.msra.gmra.mrb[4].mxu0 %v4150_v62 }
 0x698   : > { %5728 = vmatpush3.bf16.msra.mxu0 %v5712_v8  ;;  %5438 = vmatprep.mubr.msk.f32.mxu0 %vm6115_vm0, %v6116_v1 }
 0x69f   : > { %5439 = vmatmul.mubr.f32.vlgmr.msra.gmra.mrb[4].mxu0 %v4150_v62 }
 0x6a0   : > { %6018 = shalt.err (!%p6015_p13)
}
 0x6a1   : > { %s6019_s26 = scalar_lea.hbm %s6864_s19, 128  ;;  %s6023_s24 = scalar_lea.hbm %s6947_s8, 256 }
 0x6a2   : > { %p6020_p6 = scmp.ne.s32.totalorder %s6864_s19, %s6019_s26  ;;  %p6024_p5 = scmp.lt.u32.totalorder %s6864_s19, %s6947_s8 }
 0x6a3   : > { %p6025_p8 = scmp.lt.u32.totalorder %s6023_s24, %s6019_s26  ;;  %p6027_p0 = scmp.lt.u32.totalorder %s6019_s26, %s6864_s19 }
 0x6a4   : > { %p6021_p10 = pnand %p6020_p6, %p6964_p1 }
 0x6a5   : > { %p6026_p11 = por %p6025_p8, %p6024_p5 }
 0x6a6   : > { %p6022_p4 = pneg %p6021_p10 }
 0x6a7   : > { %p6028_p3 = por %p6027_p0, %p6026_p11 }
 0x6a9   : > { %p6029_p7 = pnand %p6028_p3, %p6022_p4 }
 0x6ab   : > { %6032 = shalt.err (!%p6029_p7)
}
 0x6ac   : > { %5830 = dma.vmem_to_hbm [thread:$0]  (%p6964_p1), %s4579_s18, 128, %s6864_s19, %s4552_s25   ;;  %v2596_v0 = vsub.s32 2, %v6584_v24 }
 0x6ad   : > { %s368_s14 = scalar_lea.vmem [#allocation8], %s6343_s10  ;;  %s6894_s0 = scalar_lea.hbm %s6946_s7, %s4728_s16 }
 0x6ae   : > { %v2597_v1 = vrot.slane %v6590_v27, %v2596_v0  ;;  %s4565_s11 = sshll.u32 %s368_s14, 4  ;;  %s4547_s19 = scalar_lea.sflag [#allocation4], %s6340_s21  ;;  %s6896_s11 = int_to_ptr.vmem [resolvable:$true] %s4565_s11 }
 0x6af   : > { %s6033_s18 = scalar_lea.vmem %s6896_s11, 128  ;;  %s6125_s10 = smov [#allocation8]  }
 0x6b0   : > { %p6034_p9 = scmp.ne.s32.totalorder %s6896_s11, %s6033_s18  ;;  %s6037_s9 = sshll.u32 %s6125_s10, 4  ;;  %s6038_s9 = int_to_ptr.vmem [resolvable:$false] %s6037_s9 }
 0x6b1   : > { %s6039_s25 = scalar_lea.vmem %s6038_s9, 256  ;;  %p6040_p13 = scmp.lt.s32.totalorder %s6896_s11, %s6038_s9 }
 0x6b2   : > { %p6035_p12 = pnand %p6034_p9, %p6964_p1  ;;  %p6041_p6 = scmp.lt.s32.totalorder %s6039_s25, %s6033_s18 }
 0x6b4   : > { %p6036_p2 = pneg %p6035_p12  ;;  %p6042_p10 = por %p6041_p6, %p6040_p13 }
 0x6b6   : > { %p6043_p4 = pnand %p6042_p10, %p6036_p2 }
 0x772   : > { %v4538_v40 = vpop.f32.mrb[4].mxu0 }
 0x773   : > { %v5734_v41 = vadd.f32 %v4538_v40, %v2597_v1  ;;  %v5440_v43 = vpop.f32.mrb[5].mxu0 }
 0x775   : > { %4544 = vst.msk [vmem:[%s368_s14] sm:$0xff] %vm393_vm2, %v5734_v41 }
 0x776   : > { %6046 = shalt.err (!%p6043_p4)
}
 0x777   : > { %s6047_s21 = scalar_lea.hbm %s6894_s0, 128  ;;  %s6051_s15 = scalar_lea.hbm %s6946_s7, 256 }
 0x778   : > { %p6048_p5 = scmp.ne.s32.totalorder %s6894_s0, %s6047_s21  ;;  %p6052_p0 = scmp.lt.u32.totalorder %s6894_s0, %s6946_s7 }
 0x779   : > { %p6053_p3 = scmp.lt.u32.totalorder %s6051_s15, %s6047_s21  ;;  %p6055_p9 = scmp.lt.u32.totalorder %s6047_s21, %s6894_s0 }
 0x77a   : > { %p6049_p8 = pnand %p6048_p5, %p6964_p1 }
 0x77b   : > { %p6054_p7 = por %p6053_p3, %p6052_p0 }
 0x77c   : > { %p6050_p11 = pneg %p6049_p8 }
 0x77d   : > { %p6056_p12 = por %p6055_p9, %p6054_p7 }
 0x77f   : > { %p6057_p2 = pnand %p6056_p12, %p6050_p11 }
 0x781   : > { %6060 = shalt.err (!%p6057_p2)
}
 0x782   : > { %5829 = dma.vmem_to_hbm [thread:$0]  (%p6964_p1), %s6896_s11, 128, %s6894_s0, %s4547_s19  }
 0x783 PF: > { %s4590_s26 = sand.u32 1, %s6095_s27   ;;  %p6965_p13 = scmp.ne.s32.totalorder %s6953_s12, 0 }
 0x784   : > { %p6966_p6 = scmp.ge.s32.totalorder %s6107_s30, 2  ;;  %s4591_s17 = scalar_lea.sflag [#allocation4], %s4590_s26 }
 0x786   : > { %p5845_p10 = pnand %p6966_p6, %p6965_p13 }
 0x788   : > { %6086 = dma.done.wait (!%p5845_p10), %s4591_s17, 128  }
 0x789   : > { %6088 = vsyncadd (!%p5845_p10), %s4591_s17, 4294967168  ;;  %s4600_s18 = scalar_lea.sflag [#allocation10], %s4590_s26 }
 0x78a   : > { %6090 = dma.done.wait (!%p5845_p10), %s4600_s18, 128  }
 0x78b   : > { %6092 = vsyncadd (!%p5845_p10), %s4600_s18, 4294967168  ;;  %p26_p1 = scmp.ge.s32.totalorder %s6281_s20, 4   ;;  %s6967_s27 = smov %s6099_s28 }
 0x78c   : > { %s6968_s28 = smov %s6103_s29  ;;  %s6969_s29 = smov %s6297_s23 }
 0x78d   : > { %s6970_s30 = smov %s6281_s20  ;;  %28 = sbr.rel (!%p26_p1) target bundleno = 10 (0xa), region = 121 }
 0x794   :  { %4605 = vsyncpa [#allocation3], 1 }
 0x795   :  { %4607 = vsyncpa [#allocation3 + $0x1], 1 }
 0x796   :  { %4608 = vsyncpa [#allocation6], 1 }
 0x797   :  { %4609 = vsyncpa [#allocation4], 1 }
 0x798   :  { %4611 = vsyncpa [#allocation4 + $0x1], 1 }
 0x799   :  { %4612 = vsyncpa [#allocation10], 1 }
 0x79a   :  { %4614 = vsyncpa [#allocation10 + $0x1], 1 }

</bundles_post_ra>
